<compile_context>
chip_gen: v5e
topology: v5e:2x2
jax: 0.10.0
libtpu: 0.0.40
codegen_flags: <defaults>
</compile_context>

<pallas_src>
import functools

import jax
import jax.numpy as jnp
from jax.experimental import pallas as pl
from jax.experimental.pallas import tpu as pltpu

DROPOUT = 0.1  # TODO(synk): dropout implemented as identity (eval-mode semantics).

_MM_DTYPE = jnp.bfloat16          # MXU operand dtype (f32 accumulation kept)
_VMEM_LIMIT = 32 * 1024 * 1024    # explicit scoped-VMEM limit (safe on v5e/v6e/v7x)
_LN_EPS = 1e-5


def _mm(a, b):
    """MXU matmul with bf16 operands and f32 accumulation."""
    return jnp.dot(a.astype(_MM_DTYPE), b.astype(_MM_DTYPE),
                   preferred_element_type=jnp.float32)


def _tile(dim, preferred, align):
    """Largest tile <= preferred that is a multiple of `align` and divides
    `dim`; falls back to the full dimension (always a legal block size)."""
    start = (min(preferred, dim) // align) * align
    for t in range(start, align - 1, -align):
        if dim % t == 0:
            return t
    return dim


# --------------------------------------------------------------------------
# Kernel 1: tiled matmul + bias (used for the fused QKV projection)
# --------------------------------------------------------------------------
def _matmul_bias_kernel(x_ref, w_ref, b_ref, o_ref, acc_ref, *, activation):
    k = pl.program_id(2)

    @pl.when(k == 0)
    def _():
        acc_ref[...] = jnp.zeros_like(acc_ref)

    acc_ref[...] += _mm(x_ref[...], w_ref[...])

    @pl.when(k == pl.num_programs(2) - 1)
    def _():
        y = acc_ref[...] + b_ref[...]          # bias only in the finalize
        if activation == "relu":
            y = jnp.maximum(y, 0.0)
        o_ref[...] = y


def matmul_bias(x, w, b, activation=None):
    m, kdim = x.shape
    n = w.shape[1]
    tm = _tile(m, 256, 8)
    tk = _tile(kdim, 512, 128)
    tn = _tile(n, 256, 128)
    kern = functools.partial(_matmul_bias_kernel, activation=activation)
    return pl.pallas_call(
        kern,
        out_shape=jax.ShapeDtypeStruct((m, n), jnp.float32),
        grid_spec=pltpu.PrefetchScalarGridSpec(
            num_scalar_prefetch=0,
            grid=(m // tm, n // tn, kdim // tk),
            in_specs=[
                pl.BlockSpec((tm, tk), lambda i, j, k: (i, k)),
                pl.BlockSpec((tk, tn), lambda i, j, k: (k, j)),
                pl.BlockSpec((1, tn), lambda i, j, k: (0, j)),
            ],
            out_specs=pl.BlockSpec((tm, tn), lambda i, j, k: (i, j)),
            scratch_shapes=[pltpu.VMEM((tm, tn), jnp.float32)],
        ),
        compiler_params=pltpu.CompilerParams(
            dimension_semantics=("parallel", "parallel", "arbitrary"),
            vmem_limit_bytes=_VMEM_LIMIT,
        ),
    )(x, w, b.reshape(1, n))


# --------------------------------------------------------------------------
# Kernel 2: tiled matmul + bias + residual + LayerNorm fused in the epilogue
# (used for the attention output projection)
# --------------------------------------------------------------------------
def _matmul_res_ln_kernel(x_ref, w_ref, b_ref, res_ref, g_ref, bt_ref,
                          o_ref, acc_ref, *, eps):
    k = pl.program_id(1)

    @pl.when(k == 0)
    def _():
        acc_ref[...] = jnp.zeros_like(acc_ref)

    acc_ref[...] += _mm(x_ref[...], w_ref[...])

    @pl.when(k == pl.num_programs(1) - 1)
    def _():
        z = acc_ref[...] + b_ref[...] + res_ref[...]   # residual (dropout == id)
        mean = jnp.mean(z, axis=-1, keepdims=True)
        cent = z - mean
        var = jnp.mean(cent * cent, axis=-1, keepdims=True)
        o_ref[...] = cent * jax.lax.rsqrt(var + eps) * g_ref[...] + bt_ref[...]


def matmul_res_ln(x, w, b, res, gamma, beta):
    m, kdim = x.shape
    n = w.shape[1]                      # == E, kept whole (LN needs the full row)
    tm = _tile(m, 256, 8)
    tk = _tile(kdim, 512, 128)
    kern = functools.partial(_matmul_res_ln_kernel, eps=_LN_EPS)
    return pl.pallas_call(
        kern,
        out_shape=jax.ShapeDtypeStruct((m, n), jnp.float32),
        grid_spec=pltpu.PrefetchScalarGridSpec(
            num_scalar_prefetch=0,
            grid=(m // tm, kdim // tk),
            in_specs=[
                pl.BlockSpec((tm, tk), lambda i, k: (i, k)),
                pl.BlockSpec((tk, n), lambda i, k: (k, 0)),
                pl.BlockSpec((1, n), lambda i, k: (0, 0)),
                pl.BlockSpec((tm, n), lambda i, k: (i, 0)),
                pl.BlockSpec((1, n), lambda i, k: (0, 0)),
                pl.BlockSpec((1, n), lambda i, k: (0, 0)),
            ],
            out_specs=pl.BlockSpec((tm, n), lambda i, k: (i, 0)),
            scratch_shapes=[pltpu.VMEM((tm, n), jnp.float32)],
        ),
        compiler_params=pltpu.CompilerParams(
            dimension_semantics=("parallel", "arbitrary"),
            vmem_limit_bytes=_VMEM_LIMIT,
        ),
    )(x, w, b.reshape(1, n), res, gamma.reshape(1, n), beta.reshape(1, n))


# --------------------------------------------------------------------------
# Kernel 3: whole FFN (fc1 -> ReLU -> fc2) + residual + LayerNorm.
# d_ff is the grid reduction axis, so the (M, d_ff) intermediate stays in
# registers/VMEM and never hits HBM.
# --------------------------------------------------------------------------
def _ffn_res_ln_kernel(x_ref, w1_ref, b1_ref, w2_ref, b2_ref, g_ref, bt_ref,
                       o_ref, acc_ref, *, eps):
    f = pl.program_id(1)

    @pl.when(f == 0)
    def _():
        acc_ref[...] = jnp.zeros_like(acc_ref)

    h = _mm(x_ref[...], w1_ref[...]) + b1_ref[...]
    h = jnp.maximum(h, 0.0)                      # ReLU (f32)
    acc_ref[...] += _mm(h, w2_ref[...])

    @pl.when(f == pl.num_programs(1) - 1)
    def _():
        # x_ref is also the residual (same block, resident across f).
        z = acc_ref[...] + b2_ref[...] + x_ref[...]
        mean = jnp.mean(z, axis=-1, keepdims=True)
        cent = z - mean
        var = jnp.mean(cent * cent, axis=-1, keepdims=True)
        o_ref[...] = cent * jax.lax.rsqrt(var + eps) * g_ref[...] + bt_ref[...]


def ffn_res_ln(x, w1, b1, w2, b2, gamma, beta):
    m, e = x.shape
    dff = w1.shape[1]
    tm = _tile(m, 256, 8)
    tf = _tile(dff, 512, 128)
    kern = functools.partial(_ffn_res_ln_kernel, eps=_LN_EPS)
    return pl.pallas_call(
        kern,
        out_shape=jax.ShapeDtypeStruct((m, e), jnp.float32),
        grid_spec=pltpu.PrefetchScalarGridSpec(
            num_scalar_prefetch=0,
            grid=(m // tm, dff // tf),
            in_specs=[
                pl.BlockSpec((tm, e), lambda i, f: (i, 0)),   # x / residual
                pl.BlockSpec((e, tf), lambda i, f: (0, f)),   # w1
                pl.BlockSpec((1, tf), lambda i, f: (0, f)),   # b1
                pl.BlockSpec((tf, e), lambda i, f: (f, 0)),   # w2
                pl.BlockSpec((1, e), lambda i, f: (0, 0)),    # b2
                pl.BlockSpec((1, e), lambda i, f: (0, 0)),    # gamma
                pl.BlockSpec((1, e), lambda i, f: (0, 0)),    # beta
            ],
            out_specs=pl.BlockSpec((tm, e), lambda i, f: (i, 0)),
            scratch_shapes=[pltpu.VMEM((tm, e), jnp.float32)],
        ),
        compiler_params=pltpu.CompilerParams(
            dimension_semantics=("parallel", "arbitrary"),
            vmem_limit_bytes=_VMEM_LIMIT,
        ),
    )(x, w1, b1.reshape(1, dff), w2, b2.reshape(1, e),
      gamma.reshape(1, e), beta.reshape(1, e))


# --------------------------------------------------------------------------
# Kernel 4: attention.  One grid step per batch element; all heads stay in a
# single lane-dense (S, 3E) tile (no HBM-level head transposes), per-head
# slicing happens in-register.  dot_general contracts q/k last dims directly.
# --------------------------------------------------------------------------
def _attention_kernel(qkv_ref, o_ref, *, heads, dk, scale):
    qkv = qkv_ref[0]                      # (S, 3E)
    e = heads * dk
    outs = []
    for h in range(heads):                # static, small head count
        q = qkv[:, h * dk:(h + 1) * dk]
        k = qkv[:, e + h * dk:e + (h + 1) * dk]
        v = qkv[:, 2 * e + h * dk:2 * e + (h + 1) * dk]
        s = jax.lax.dot_general(
            q.astype(_MM_DTYPE), k.astype(_MM_DTYPE),
            (((1,), (1,)), ((), ())),      # contract last dims: q @ k^T, no .T
            preferred_element_type=jnp.float32) * scale
        s = s - jnp.max(s, axis=-1, keepdims=True)   # stable softmax (f32)
        p = jnp.exp(s)
        p = p * pl.reciprocal(jnp.sum(p, axis=-1, keepdims=True), approx=True)
        outs.append(_mm(p, v))
    o_ref[0] = jnp.concatenate(outs, axis=-1)        # (S, E), lane-dense store


def attention(qkv, heads):
    # TODO(synk): for long S, switch to a flash-style KV-blocked grid with
    # online softmax instead of materializing the full SxS score matrix.
    b, s, e3 = qkv.shape
    e = e3 // 3
    dk = e // heads
    kern = functools.partial(_attention_kernel, heads=heads, dk=dk,
                             scale=1.0 / (dk ** 0.5))
    return pl.pallas_call(
        kern,
        out_shape=jax.ShapeDtypeStruct((b, s, e), jnp.float32),
        grid=(b,),
        in_specs=[pl.BlockSpec((1, s, e3), lambda i: (i, 0, 0))],
        out_specs=pl.BlockSpec((1, s, e), lambda i: (i, 0, 0)),
        compiler_params=pltpu.CompilerParams(
            dimension_semantics=("parallel",),
            vmem_limit_bytes=_VMEM_LIMIT,
        ),
    )(qkv)


# ------------------------------ model (glue) -------------------------------
def encoder_layer(x, p, heads):
    b, s, e = x.shape
    m = b * s
    x2 = x.reshape(m, e)

    # fused Q|K|V projection: one matmul instead of three
    qkv = matmul_bias(x2, p["wqkv"], p["bqkv"])            # (M, 3E)
    attn = attention(qkv.reshape(b, s, 3 * e), heads)      # (B, S, E)

    # out-projection + residual + LayerNorm fused
    h = matmul_res_ln(attn.reshape(m, e), p["wo"], p["bo"],
                      x2, p["ln_g"], p["ln_b"])            # (M, E)

    # FFN + residual + LayerNorm fused (same LayerNorm params, as in reference)
    out = ffn_res_ln(h, p["w1"], p["b1"], p["w2"], p["b2"],
                     p["ln_g"], p["ln_b"])                 # (M, E)
    return out.reshape(b, s, e)


def encoder_forward(tokens, params, heads):
    x = params["embed"][tokens]            # (B, S, E) embedding lookup (glue)
    b = tokens.shape[0]
    # NOTE: reproduces the reference module exactly: pe buffer is
    # (max_len, 1, d_model) and `x + pe[:x.size(0)]` slices by BATCH index and
    # broadcasts over the sequence axis.
    x = x + params["pe"][:b][:, None, :]
    for lp in params["layers"]:
        x = encoder_layer(x, lp, heads)
    return x


# ------------------------------ parameters --------------------------------
def init_params(key, vocab_size, embed_size, num_layers, heads,
                d_ff=2048, max_len=5000):
    keys = jax.random.split(key, 1 + num_layers)
    params = {}
    params["embed"] = jax.random.normal(
        keys[0], (vocab_size, embed_size), jnp.float32)

    # sinusoidal positional-encoding table (max_len, E)
    pos = jnp.arange(max_len, dtype=jnp.float32)[:, None]
    div = jnp.exp(jnp.arange(0, embed_size, 2, dtype=jnp.float32)
                  * (-jnp.log(10000.0) / embed_size))
    pe = jnp.zeros((max_len, embed_size), jnp.float32)
    pe = pe.at[:, 0::2].set(jnp.sin(pos * div))
    pe = pe.at[:, 1::2].set(jnp.cos(pos * div))
    params["pe"] = pe

    def lin_init(k, fan_in, fan_out):
        k1, k2 = jax.random.split(k)
        bound = 1.0 / (fan_in ** 0.5)
        w = jax.random.uniform(k1, (fan_in, fan_out), jnp.float32, -bound, bound)
        b = jax.random.uniform(k2, (fan_out,), jnp.float32, -bound, bound)
        return w, b

    layers = []
    for li in range(num_layers):
        lk = jax.random.split(keys[1 + li], 6)
        wq, bq = lin_init(lk[0], embed_size, embed_size)
        wk, bk = lin_init(lk[1], embed_size, embed_size)
        wv, bv = lin_init(lk[2], embed_size, embed_size)
        wo, bo = lin_init(lk[3], embed_size, embed_size)
        w1, b1 = lin_init(lk[4], embed_size, d_ff)
        w2, b2 = lin_init(lk[5], d_ff, embed_size)
        layers.append(dict(
            wqkv=jnp.concatenate([wq, wk, wv], axis=1),   # (E, 3E) fused weight
            bqkv=jnp.concatenate([bq, bk, bv], axis=0),   # (3E,)
            wo=wo, bo=bo, w1=w1, b1=b1, w2=w2, b2=b2,
            ln_g=jnp.ones((embed_size,), jnp.float32),
            ln_b=jnp.zeros((embed_size,), jnp.float32),
        ))
    params["layers"] = layers
    return params


# --------------------------------- main ------------------------------------
if __name__ == "__main__":
    vocab_size, embed_size, num_layers, heads = 100, 32, 2, 4
    B, S = 2, 8

    key = jax.random.PRNGKey(0)
    pkey, xkey = jax.random.split(key)
    params = init_params(pkey, vocab_size, embed_size, num_layers, heads)
    tokens = jax.random.randint(xkey, (B, S), 0, vocab_size, dtype=jnp.int32)

    forward = jax.jit(encoder_forward, static_argnums=(2,))
    out = forward(tokens, params, heads)
    jax.block_until_ready(out)
    assert out.shape == (B, S, embed_size)
    print("KERNEL_OK")
</pallas_src>

<mosaic_0001>
module attributes {stable_mosaic.version = 11 : i64} {
  func.func @_matmul_bias_kernel(%arg0: i32, %arg1: i32, %arg2: i32, %arg3: memref<16x32xf32, #tpu.memory_space<vmem>>, %arg4: memref<32x96xf32, #tpu.memory_space<vmem>>, %arg5: memref<1x96xf32, #tpu.memory_space<vmem>>, %arg6: memref<16x96xf32, #tpu.memory_space<vmem>>, %arg7: memref<16x96xf32, #tpu.memory_space<vmem>>) attributes {dimension_semantics = [#tpu.dimension_semantics<parallel>, #tpu.dimension_semantics<parallel>, #tpu.dimension_semantics<arbitrary>], iteration_bounds = array<i64: 1, 1, 1>, scalar_prefetch = 0 : i64, scratch_operands = 1 : i64, tpu.core_type = #tpu.core_type<tc>, window_params = [{transform_indices = @transform_0, window_bounds = array<i64: 16, 32>}, {transform_indices = @transform_1, window_bounds = array<i64: 32, 96>}, {transform_indices = @transform_2, window_bounds = array<i64: 1, 96>}, {transform_indices = @transform_3, window_bounds = array<i64: 16, 96>}]} {
    %c0_i32 = arith.constant 0 : i32
    %0 = arith.cmpi eq, %arg2, %c0_i32 : i32
    %1 = arith.extui %0 : i1 to i32
    %c0_i32_0 = arith.constant 0 : i32
    %2 = arith.cmpi ne, %1, %c0_i32_0 : i32
    scf.if %2 {
      %cst_10 = arith.constant 0.000000e+00 : f32
      %14 = vector.broadcast %cst_10 : f32 to vector<16x96xf32>
      %c0_11 = arith.constant 0 : index
      %c0_12 = arith.constant 0 : index
      %15 = vector.load %arg7[%c0_11, %c0_12] : memref<16x96xf32, #tpu.memory_space<vmem>>, vector<16x96xf32>
      tpu.vector_store %arg7[%c0_11, %c0_12], %14 {strides = array<i32>} : memref<16x96xf32, #tpu.memory_space<vmem>>, vector<16x96xf32>,
    } else {
    }
    %c0 = arith.constant 0 : index
    %c0_1 = arith.constant 0 : index
    %3 = vector.load %arg7[%c0, %c0_1] : memref<16x96xf32, #tpu.memory_space<vmem>>, vector<16x96xf32>
    %c0_2 = arith.constant 0 : index
    %c0_3 = arith.constant 0 : index
    %4 = vector.load %arg3[%c0_2, %c0_3] : memref<16x32xf32, #tpu.memory_space<vmem>>, vector<16x32xf32>
    %c0_4 = arith.constant 0 : index
    %c0_5 = arith.constant 0 : index
    %5 = vector.load %arg4[%c0_4, %c0_5] : memref<32x96xf32, #tpu.memory_space<vmem>>, vector<32x96xf32>
    %6 = arith.truncf %4 : vector<16x32xf32> to vector<16x32xbf16>
    %7 = arith.truncf %5 : vector<32x96xf32> to vector<32x96xbf16>
    %cst = arith.constant dense<0.000000e+00> : vector<16x96xf32>
    %8 = tpu.matmul %6, %7, %cst {dimension_numbers = #tpu.dot_dimension_numbers<[1], [0], [0], [1], [0, 0, 1, 1], [], []>} : vector<16x32xbf16>, vector<32x96xbf16>, vector<16x96xf32> -> vector<16x96xf32>
    %9 = arith.addf %3, %8 : vector<16x96xf32>
    %c0_6 = arith.constant 0 : index
    %c0_7 = arith.constant 0 : index
    %10 = vector.load %arg7[%c0_6, %c0_7] : memref<16x96xf32, #tpu.memory_space<vmem>>, vector<16x96xf32>
    tpu.vector_store %arg7[%c0_6, %c0_7], %9 {strides = array<i32>} : memref<16x96xf32, #tpu.memory_space<vmem>>, vector<16x96xf32>,
    %c0_i32_8 = arith.constant 0 : i32
    %11 = arith.cmpi eq, %arg2, %c0_i32_8 : i32
    %12 = arith.extui %11 : i1 to i32
    %c0_i32_9 = arith.constant 0 : i32
    %13 = arith.cmpi ne, %12, %c0_i32_9 : i32
    scf.if %13 {
      %c0_10 = arith.constant 0 : index
      %c0_11 = arith.constant 0 : index
      %14 = vector.load %arg7[%c0_10, %c0_11] : memref<16x96xf32, #tpu.memory_space<vmem>>, vector<16x96xf32>
      %c0_12 = arith.constant 0 : index
      %c0_13 = arith.constant 0 : index
      %15 = vector.load %arg5[%c0_12, %c0_13] : memref<1x96xf32, #tpu.memory_space<vmem>>, vector<1x96xf32>
      %16 = vector.broadcast %15 : vector<1x96xf32> to vector<16x96xf32>
      %17 = arith.addf %14, %16 : vector<16x96xf32>
      %c0_14 = arith.constant 0 : index
      %c0_15 = arith.constant 0 : index
      %18 = vector.load %arg6[%c0_14, %c0_15] : memref<16x96xf32, #tpu.memory_space<vmem>>, vector<16x96xf32>
      tpu.vector_store %arg6[%c0_14, %c0_15], %17 {strides = array<i32>} : memref<16x96xf32, #tpu.memory_space<vmem>>, vector<16x96xf32>,
    } else {
    }
    return
  }
  func.func @transform_0(%arg0: i32, %arg1: i32, %arg2: i32) -> (i32, i32) {
    %c0_i32 = arith.constant 0 : i32
    return %arg0, %arg2 : i32, i32
  }
  func.func @transform_1(%arg0: i32, %arg1: i32, %arg2: i32) -> (i32, i32) {
    %c0_i32 = arith.constant 0 : i32
    return %arg2, %arg1 : i32, i32
  }
  func.func @transform_2(%arg0: i32, %arg1: i32, %arg2: i32) -> (i32, i32) {
    %c0_i32 = arith.constant 0 : i32
    %c0_i32_0 = arith.constant 0 : i32
    return %c0_i32, %arg1 : i32, i32
  }
  func.func @transform_3(%arg0: i32, %arg1: i32, %arg2: i32) -> (i32, i32) {
    %c0_i32 = arith.constant 0 : i32
    return %arg0, %arg1 : i32, i32
  }
}

module attributes {stable_mosaic.version = 11 : i64} {
  func.func @_matmul_res_ln_kernel(%arg0: i32, %arg1: i32, %arg2: memref<16x32xf32, #tpu.memory_space<vmem>>, %arg3: memref<32x32xf32, #tpu.memory_space<vmem>>, %arg4: memref<1x32xf32, #tpu.memory_space<vmem>>, %arg5: memref<16x32xf32, #tpu.memory_space<vmem>>, %arg6: memref<1x32xf32, #tpu.memory_space<vmem>>, %arg7: memref<1x32xf32, #tpu.memory_space<vmem>>, %arg8: memref<16x32xf32, #tpu.memory_space<vmem>>, %arg9: memref<16x32xf32, #tpu.memory_space<vmem>>) attributes {dimension_semantics = [#tpu.dimension_semantics<parallel>, #tpu.dimension_semantics<arbitrary>], iteration_bounds = array<i64: 1, 1>, scalar_prefetch = 0 : i64, scratch_operands = 1 : i64, tpu.core_type = #tpu.core_type<tc>, window_params = [{transform_indices = @transform_0, window_bounds = array<i64: 16, 32>}, {transform_indices = @transform_1, window_bounds = array<i64: 32, 32>}, {pipeline_mode = #tpu.pipeline_mode<synchronous>, transform_indices = @transform_2, window_bounds = array<i64: 1, 32>}, {transform_indices = @transform_3, window_bounds = array<i64: 16, 32>}, {pipeline_mode = #tpu.pipeline_mode<synchronous>, transform_indices = @transform_4, window_bounds = array<i64: 1, 32>}, {pipeline_mode = #tpu.pipeline_mode<synchronous>, transform_indices = @transform_5, window_bounds = array<i64: 1, 32>}, {transform_indices = @transform_6, window_bounds = array<i64: 16, 32>}]} {
    %c0_i32 = arith.constant 0 : i32
    %0 = arith.cmpi eq, %arg1, %c0_i32 : i32
    %1 = arith.extui %0 : i1 to i32
    %c0_i32_0 = arith.constant 0 : i32
    %2 = arith.cmpi ne, %1, %c0_i32_0 : i32
    scf.if %2 {
      %cst_10 = arith.constant 0.000000e+00 : f32
      %14 = vector.broadcast %cst_10 : f32 to vector<16x32xf32>
      %c0_11 = arith.constant 0 : index
      %c0_12 = arith.constant 0 : index
      %15 = vector.load %arg9[%c0_11, %c0_12] : memref<16x32xf32, #tpu.memory_space<vmem>>, vector<16x32xf32>
      tpu.vector_store %arg9[%c0_11, %c0_12], %14 {strides = array<i32>} : memref<16x32xf32, #tpu.memory_space<vmem>>, vector<16x32xf32>,
    } else {
    }
    %c0 = arith.constant 0 : index
    %c0_1 = arith.constant 0 : index
    %3 = vector.load %arg9[%c0, %c0_1] : memref<16x32xf32, #tpu.memory_space<vmem>>, vector<16x32xf32>
    %c0_2 = arith.constant 0 : index
    %c0_3 = arith.constant 0 : index
    %4 = vector.load %arg2[%c0_2, %c0_3] : memref<16x32xf32, #tpu.memory_space<vmem>>, vector<16x32xf32>
    %c0_4 = arith.constant 0 : index
    %c0_5 = arith.constant 0 : index
    %5 = vector.load %arg3[%c0_4, %c0_5] : memref<32x32xf32, #tpu.memory_space<vmem>>, vector<32x32xf32>
    %6 = arith.truncf %4 : vector<16x32xf32> to vector<16x32xbf16>
    %7 = arith.truncf %5 : vector<32x32xf32> to vector<32x32xbf16>
    %cst = arith.constant dense<0.000000e+00> : vector<16x32xf32>
    %8 = tpu.matmul %6, %7, %cst {dimension_numbers = #tpu.dot_dimension_numbers<[1], [0], [0], [1], [0, 0, 1, 1], [], []>} : vector<16x32xbf16>, vector<32x32xbf16>, vector<16x32xf32> -> vector<16x32xf32>
    %9 = arith.addf %3, %8 : vector<16x32xf32>
    %c0_6 = arith.constant 0 : index
    %c0_7 = arith.constant 0 : index
    %10 = vector.load %arg9[%c0_6, %c0_7] : memref<16x32xf32, #tpu.memory_space<vmem>>, vector<16x32xf32>
    tpu.vector_store %arg9[%c0_6, %c0_7], %9 {strides = array<i32>} : memref<16x32xf32, #tpu.memory_space<vmem>>, vector<16x32xf32>,
    %c0_i32_8 = arith.constant 0 : i32
    %11 = arith.cmpi eq, %arg1, %c0_i32_8 : i32
    %12 = arith.extui %11 : i1 to i32
    %c0_i32_9 = arith.constant 0 : i32
    %13 = arith.cmpi ne, %12, %c0_i32_9 : i32
    scf.if %13 {
      %c0_10 = arith.constant 0 : index
      %c0_11 = arith.constant 0 : index
      %14 = vector.load %arg9[%c0_10, %c0_11] : memref<16x32xf32, #tpu.memory_space<vmem>>, vector<16x32xf32>
      %c0_12 = arith.constant 0 : index
      %c0_13 = arith.constant 0 : index
      %15 = vector.load %arg4[%c0_12, %c0_13] : memref<1x32xf32, #tpu.memory_space<vmem>>, vector<1x32xf32>
      %16 = vector.broadcast %15 : vector<1x32xf32> to vector<16x32xf32>
      %17 = arith.addf %14, %16 : vector<16x32xf32>
      %c0_14 = arith.constant 0 : index
      %c0_15 = arith.constant 0 : index
      %18 = vector.load %arg5[%c0_14, %c0_15] : memref<16x32xf32, #tpu.memory_space<vmem>>, vector<16x32xf32>
      %19 = arith.addf %17, %18 : vector<16x32xf32>
      %cst_16 = arith.constant dense<0.000000e+00> : vector<16xf32>
      %20 = vector.multi_reduction <add>, %19, %cst_16 [1] : vector<16x32xf32> to vector<16xf32>
      %21 = vector.shape_cast %20 : vector<16xf32> to vector<16x1xf32>
      %cst_17 = arith.constant 3.200000e+01 : f32
      %22 = vector.broadcast %cst_17 : f32 to vector<16x1xf32>
      %23 = arith.divf %21, %22 : vector<16x1xf32>
      %24 = vector.broadcast %23 : vector<16x1xf32> to vector<16x32xf32>
      %25 = arith.subf %19, %24 : vector<16x32xf32>
      %26 = arith.mulf %25, %25 : vector<16x32xf32>
      %cst_18 = arith.constant dense<0.000000e+00> : vector<16xf32>
      %27 = vector.multi_reduction <add>, %26, %cst_18 [1] : vector<16x32xf32> to vector<16xf32>
      %28 = vector.shape_cast %27 : vector<16xf32> to vector<16x1xf32>
      %cst_19 = arith.constant 3.200000e+01 : f32
      %29 = vector.broadcast %cst_19 : f32 to vector<16x1xf32>
      %30 = arith.divf %28, %29 : vector<16x1xf32>
      %cst_20 = arith.constant 9.99999974E-6 : f32
      %31 = vector.broadcast %cst_20 : f32 to vector<16x1xf32>
      %32 = arith.addf %30, %31 : vector<16x1xf32>
      %33 = math.rsqrt %32 : vector<16x1xf32>
      %34 = vector.broadcast %33 : vector<16x1xf32> to vector<16x32xf32>
      %35 = arith.mulf %25, %34 : vector<16x32xf32>
      %c0_21 = arith.constant 0 : index
      %c0_22 = arith.constant 0 : index
      %36 = vector.load %arg6[%c0_21, %c0_22] : memref<1x32xf32, #tpu.memory_space<vmem>>, vector<1x32xf32>
      %37 = vector.broadcast %36 : vector<1x32xf32> to vector<16x32xf32>
      %38 = arith.mulf %35, %37 : vector<16x32xf32>
      %c0_23 = arith.constant 0 : index
      %c0_24 = arith.constant 0 : index
      %39 = vector.load %arg7[%c0_23, %c0_24] : memref<1x32xf32, #tpu.memory_space<vmem>>, vector<1x32xf32>
      %40 = vector.broadcast %39 : vector<1x32xf32> to vector<16x32xf32>
      %41 = arith.addf %38, %40 : vector<16x32xf32>
      %c0_25 = arith.constant 0 : index
      %c0_26 = arith.constant 0 : index
      %42 = vector.load %arg8[%c0_25, %c0_26] : memref<16x32xf32, #tpu.memory_space<vmem>>, vector<16x32xf32>
      tpu.vector_store %arg8[%c0_25, %c0_26], %41 {strides = array<i32>} : memref<16x32xf32, #tpu.memory_space<vmem>>, vector<16x32xf32>,
    } else {
    }
    return
  }
  func.func @transform_0(%arg0: i32, %arg1: i32) -> (i32, i32) {
    %c0_i32 = arith.constant 0 : i32
    return %arg0, %arg1 : i32, i32
  }
  func.func @transform_1(%arg0: i32, %arg1: i32) -> (i32, i32) {
    %c0_i32 = arith.constant 0 : i32
    %c0_i32_0 = arith.constant 0 : i32
    return %arg1, %c0_i32 : i32, i32
  }
  func.func @transform_2(%arg0: i32, %arg1: i32) -> (i32, i32) {
    %c0_i32 = arith.constant 0 : i32
    %c0_i32_0 = arith.constant 0 : i32
    %c0_i32_1 = arith.constant 0 : i32
    return %c0_i32, %c0_i32_0 : i32, i32
  }
  func.func @transform_3(%arg0: i32, %arg1: i32) -> (i32, i32) {
    %c0_i32 = arith.constant 0 : i32
    %c0_i32_0 = arith.constant 0 : i32
    return %arg0, %c0_i32 : i32, i32
  }
  func.func @transform_4(%arg0: i32, %arg1: i32) -> (i32, i32) {
    %c0_i32 = arith.constant 0 : i32
    %c0_i32_0 = arith.constant 0 : i32
    %c0_i32_1 = arith.constant 0 : i32
    return %c0_i32, %c0_i32_0 : i32, i32
  }
  func.func @transform_5(%arg0: i32, %arg1: i32) -> (i32, i32) {
    %c0_i32 = arith.constant 0 : i32
    %c0_i32_0 = arith.constant 0 : i32
    %c0_i32_1 = arith.constant 0 : i32
    return %c0_i32, %c0_i32_0 : i32, i32
  }
  func.func @transform_6(%arg0: i32, %arg1: i32) -> (i32, i32) {
    %c0_i32 = arith.constant 0 : i32
    %c0_i32_0 = arith.constant 0 : i32
    return %arg0, %c0_i32 : i32, i32
  }
}

module attributes {stable_mosaic.version = 11 : i64} {
  func.func @_attention_kernel(%arg0: i32, %arg1: memref<1x8x96xf32, #tpu.memory_space<vmem>>, %arg2: memref<1x8x32xf32, #tpu.memory_space<vmem>>) attributes {dimension_semantics = [#tpu.dimension_semantics<parallel>], iteration_bounds = array<i64: 2>, scalar_prefetch = 0 : i64, scratch_operands = 0 : i64, tpu.core_type = #tpu.core_type<tc>, window_params = [{transform_indices = @transform_0, window_bounds = array<i64: 1, 8, 96>}, {transform_indices = @transform_1, window_bounds = array<i64: 1, 8, 32>}]} {
    %c0 = arith.constant 0 : index
    %c0_0 = arith.constant 0 : index
    %c0_1 = arith.constant 0 : index
    %0 = vector.load %arg1[%c0, %c0_0, %c0_1] : memref<1x8x96xf32, #tpu.memory_space<vmem>>, vector<1x8x96xf32>
    %1 = vector.shape_cast %0 : vector<1x8x96xf32> to vector<8x96xf32>
    %2 = vector.extract_strided_slice %1 {offsets = [0, 0], sizes = [8, 8], strides = [1, 1]} : vector<8x96xf32> to vector<8x8xf32>
    %3 = vector.extract_strided_slice %1 {offsets = [0, 32], sizes = [8, 8], strides = [1, 1]} : vector<8x96xf32> to vector<8x8xf32>
    %4 = vector.extract_strided_slice %1 {offsets = [0, 64], sizes = [8, 8], strides = [1, 1]} : vector<8x96xf32> to vector<8x8xf32>
    %5 = arith.truncf %2 : vector<8x8xf32> to vector<8x8xbf16>
    %6 = arith.truncf %3 : vector<8x8xf32> to vector<8x8xbf16>
    %cst = arith.constant dense<0.000000e+00> : vector<8x8xf32>
    %7 = tpu.matmul %5, %6, %cst {dimension_numbers = #tpu.dot_dimension_numbers<[1], [1], [0], [0], [0, 0, 1, 0], [], []>} : vector<8x8xbf16>, vector<8x8xbf16>, vector<8x8xf32> -> vector<8x8xf32>
    %cst_2 = arith.constant 0.353553385 : f32
    %8 = vector.broadcast %cst_2 : f32 to vector<8x8xf32>
    %9 = arith.mulf %7, %8 : vector<8x8xf32>
    %cst_3 = arith.constant dense<0xFF800000> : vector<8xf32>
    %10 = vector.multi_reduction <maximumf>, %9, %cst_3 [1] : vector<8x8xf32> to vector<8xf32>
    %11 = vector.shape_cast %10 : vector<8xf32> to vector<8x1xf32>
    %12 = vector.broadcast %11 : vector<8x1xf32> to vector<8x8xf32>
    %13 = arith.subf %9, %12 : vector<8x8xf32>
    %14 = math.exp %13 : vector<8x8xf32>
    %cst_4 = arith.constant dense<0.000000e+00> : vector<8xf32>
    %15 = vector.multi_reduction <add>, %14, %cst_4 [1] : vector<8x8xf32> to vector<8xf32>
    %16 = vector.shape_cast %15 : vector<8xf32> to vector<8x1xf32>
    %17 = tpu.reciprocal %16 {approx = true} : vector<8x1xf32> -> vector<8x1xf32>
    %18 = vector.broadcast %17 : vector<8x1xf32> to vector<8x8xf32>
    %19 = arith.mulf %14, %18 : vector<8x8xf32>
    %20 = arith.truncf %19 : vector<8x8xf32> to vector<8x8xbf16>
    %21 = arith.truncf %4 : vector<8x8xf32> to vector<8x8xbf16>
    %cst_5 = arith.constant dense<0.000000e+00> : vector<8x8xf32>
    %22 = tpu.matmul %20, %21, %cst_5 {dimension_numbers = #tpu.dot_dimension_numbers<[1], [0], [0], [1], [0, 0, 1, 1], [], []>} : vector<8x8xbf16>, vector<8x8xbf16>, vector<8x8xf32> -> vector<8x8xf32>
    %23 = vector.extract_strided_slice %1 {offsets = [0, 8], sizes = [8, 8], strides = [1, 1]} : vector<8x96xf32> to vector<8x8xf32>
    %24 = vector.extract_strided_slice %1 {offsets = [0, 40], sizes = [8, 8], strides = [1, 1]} : vector<8x96xf32> to vector<8x8xf32>
    %25 = vector.extract_strided_slice %1 {offsets = [0, 72], sizes = [8, 8], strides = [1, 1]} : vector<8x96xf32> to vector<8x8xf32>
    %26 = arith.truncf %23 : vector<8x8xf32> to vector<8x8xbf16>
    %27 = arith.truncf %24 : vector<8x8xf32> to vector<8x8xbf16>
    %cst_6 = arith.constant dense<0.000000e+00> : vector<8x8xf32>
    %28 = tpu.matmul %26, %27, %cst_6 {dimension_numbers = #tpu.dot_dimension_numbers<[1], [1], [0], [0], [0, 0, 1, 0], [], []>} : vector<8x8xbf16>, vector<8x8xbf16>, vector<8x8xf32> -> vector<8x8xf32>
    %cst_7 = arith.constant 0.353553385 : f32
    %29 = vector.broadcast %cst_7 : f32 to vector<8x8xf32>
    %30 = arith.mulf %28, %29 : vector<8x8xf32>
    %cst_8 = arith.constant dense<0xFF800000> : vector<8xf32>
    %31 = vector.multi_reduction <maximumf>, %30, %cst_8 [1] : vector<8x8xf32> to vector<8xf32>
    %32 = vector.shape_cast %31 : vector<8xf32> to vector<8x1xf32>
    %33 = vector.broadcast %32 : vector<8x1xf32> to vector<8x8xf32>
    %34 = arith.subf %30, %33 : vector<8x8xf32>
    %35 = math.exp %34 : vector<8x8xf32>
    %cst_9 = arith.constant dense<0.000000e+00> : vector<8xf32>
    %36 = vector.multi_reduction <add>, %35, %cst_9 [1] : vector<8x8xf32> to vector<8xf32>
    %37 = vector.shape_cast %36 : vector<8xf32> to vector<8x1xf32>
    %38 = tpu.reciprocal %37 {approx = true} : vector<8x1xf32> -> vector<8x1xf32>
    %39 = vector.broadcast %38 : vector<8x1xf32> to vector<8x8xf32>
    %40 = arith.mulf %35, %39 : vector<8x8xf32>
    %41 = arith.truncf %40 : vector<8x8xf32> to vector<8x8xbf16>
    %42 = arith.truncf %25 : vector<8x8xf32> to vector<8x8xbf16>
    %cst_10 = arith.constant dense<0.000000e+00> : vector<8x8xf32>
    %43 = tpu.matmul %41, %42, %cst_10 {dimension_numbers = #tpu.dot_dimension_numbers<[1], [0], [0], [1], [0, 0, 1, 1], [], []>} : vector<8x8xbf16>, vector<8x8xbf16>, vector<8x8xf32> -> vector<8x8xf32>
    %44 = vector.extract_strided_slice %1 {offsets = [0, 16], sizes = [8, 8], strides = [1, 1]} : vector<8x96xf32> to vector<8x8xf32>
    %45 = vector.extract_strided_slice %1 {offsets = [0, 48], sizes = [8, 8], strides = [1, 1]} : vector<8x96xf32> to vector<8x8xf32>
    %46 = vector.extract_strided_slice %1 {offsets = [0, 80], sizes = [8, 8], strides = [1, 1]} : vector<8x96xf32> to vector<8x8xf32>
    %47 = arith.truncf %44 : vector<8x8xf32> to vector<8x8xbf16>
    %48 = arith.truncf %45 : vector<8x8xf32> to vector<8x8xbf16>
    %cst_11 = arith.constant dense<0.000000e+00> : vector<8x8xf32>
    %49 = tpu.matmul %47, %48, %cst_11 {dimension_numbers = #tpu.dot_dimension_numbers<[1], [1], [0], [0], [0, 0, 1, 0], [], []>} : vector<8x8xbf16>, vector<8x8xbf16>, vector<8x8xf32> -> vector<8x8xf32>
    %cst_12 = arith.constant 0.353553385 : f32
    %50 = vector.broadcast %cst_12 : f32 to vector<8x8xf32>
    %51 = arith.mulf %49, %50 : vector<8x8xf32>
    %cst_13 = arith.constant dense<0xFF800000> : vector<8xf32>
    %52 = vector.multi_reduction <maximumf>, %51, %cst_13 [1] : vector<8x8xf32> to vector<8xf32>
    %53 = vector.shape_cast %52 : vector<8xf32> to vector<8x1xf32>
    %54 = vector.broadcast %53 : vector<8x1xf32> to vector<8x8xf32>
    %55 = arith.subf %51, %54 : vector<8x8xf32>
    %56 = math.exp %55 : vector<8x8xf32>
    %cst_14 = arith.constant dense<0.000000e+00> : vector<8xf32>
    %57 = vector.multi_reduction <add>, %56, %cst_14 [1] : vector<8x8xf32> to vector<8xf32>
    %58 = vector.shape_cast %57 : vector<8xf32> to vector<8x1xf32>
    %59 = tpu.reciprocal %58 {approx = true} : vector<8x1xf32> -> vector<8x1xf32>
    %60 = vector.broadcast %59 : vector<8x1xf32> to vector<8x8xf32>
    %61 = arith.mulf %56, %60 : vector<8x8xf32>
    %62 = arith.truncf %61 : vector<8x8xf32> to vector<8x8xbf16>
    %63 = arith.truncf %46 : vector<8x8xf32> to vector<8x8xbf16>
    %cst_15 = arith.constant dense<0.000000e+00> : vector<8x8xf32>
    %64 = tpu.matmul %62, %63, %cst_15 {dimension_numbers = #tpu.dot_dimension_numbers<[1], [0], [0], [1], [0, 0, 1, 1], [], []>} : vector<8x8xbf16>, vector<8x8xbf16>, vector<8x8xf32> -> vector<8x8xf32>
    %65 = vector.extract_strided_slice %1 {offsets = [0, 24], sizes = [8, 8], strides = [1, 1]} : vector<8x96xf32> to vector<8x8xf32>
    %66 = vector.extract_strided_slice %1 {offsets = [0, 56], sizes = [8, 8], strides = [1, 1]} : vector<8x96xf32> to vector<8x8xf32>
    %67 = vector.extract_strided_slice %1 {offsets = [0, 88], sizes = [8, 8], strides = [1, 1]} : vector<8x96xf32> to vector<8x8xf32>
    %68 = arith.truncf %65 : vector<8x8xf32> to vector<8x8xbf16>
    %69 = arith.truncf %66 : vector<8x8xf32> to vector<8x8xbf16>
    %cst_16 = arith.constant dense<0.000000e+00> : vector<8x8xf32>
    %70 = tpu.matmul %68, %69, %cst_16 {dimension_numbers = #tpu.dot_dimension_numbers<[1], [1], [0], [0], [0, 0, 1, 0], [], []>} : vector<8x8xbf16>, vector<8x8xbf16>, vector<8x8xf32> -> vector<8x8xf32>
    %cst_17 = arith.constant 0.353553385 : f32
    %71 = vector.broadcast %cst_17 : f32 to vector<8x8xf32>
    %72 = arith.mulf %70, %71 : vector<8x8xf32>
    %cst_18 = arith.constant dense<0xFF800000> : vector<8xf32>
    %73 = vector.multi_reduction <maximumf>, %72, %cst_18 [1] : vector<8x8xf32> to vector<8xf32>
    %74 = vector.shape_cast %73 : vector<8xf32> to vector<8x1xf32>
    %75 = vector.broadcast %74 : vector<8x1xf32> to vector<8x8xf32>
    %76 = arith.subf %72, %75 : vector<8x8xf32>
    %77 = math.exp %76 : vector<8x8xf32>
    %cst_19 = arith.constant dense<0.000000e+00> : vector<8xf32>
    %78 = vector.multi_reduction <add>, %77, %cst_19 [1] : vector<8x8xf32> to vector<8xf32>
    %79 = vector.shape_cast %78 : vector<8xf32> to vector<8x1xf32>
    %80 = tpu.reciprocal %79 {approx = true} : vector<8x1xf32> -> vector<8x1xf32>
    %81 = vector.broadcast %80 : vector<8x1xf32> to vector<8x8xf32>
    %82 = arith.mulf %77, %81 : vector<8x8xf32>
    %83 = arith.truncf %82 : vector<8x8xf32> to vector<8x8xbf16>
    %84 = arith.truncf %67 : vector<8x8xf32> to vector<8x8xbf16>
    %cst_20 = arith.constant dense<0.000000e+00> : vector<8x8xf32>
    %85 = tpu.matmul %83, %84, %cst_20 {dimension_numbers = #tpu.dot_dimension_numbers<[1], [0], [0], [1], [0, 0, 1, 1], [], []>} : vector<8x8xbf16>, vector<8x8xbf16>, vector<8x8xf32> -> vector<8x8xf32>
    %86 = tpu.concatenate %22, %43, %64, %85 in 1 : vector<8x8xf32>, vector<8x8xf32>, vector<8x8xf32>, vector<8x8xf32> -> vector<8x32xf32>
    %c0_21 = arith.constant 0 : index
    %c0_22 = arith.constant 0 : index
    %c0_23 = arith.constant 0 : index
    %87 = vector.load %arg2[%c0_21, %c0_22, %c0_23] : memref<1x8x32xf32, #tpu.memory_space<vmem>>, vector<1x8x32xf32>
    %88 = vector.shape_cast %87 : vector<1x8x32xf32> to vector<8x32xf32>
    %89 = vector.shape_cast %86 : vector<8x32xf32> to vector<1x8x32xf32>
    tpu.vector_store %arg2[%c0_21, %c0_22, %c0_23], %89 {strides = array<i32>} : memref<1x8x32xf32, #tpu.memory_space<vmem>>, vector<1x8x32xf32>,
    return
  }
  func.func @transform_0(%arg0: i32) -> (i32, i32, i32) {
    %c0_i32 = arith.constant 0 : i32
    %c0_i32_0 = arith.constant 0 : i32
    %c0_i32_1 = arith.constant 0 : i32
    return %arg0, %c0_i32, %c0_i32_0 : i32, i32, i32
  }
  func.func @transform_1(%arg0: i32) -> (i32, i32, i32) {
    %c0_i32 = arith.constant 0 : i32
    %c0_i32_0 = arith.constant 0 : i32
    %c0_i32_1 = arith.constant 0 : i32
    return %arg0, %c0_i32, %c0_i32_0 : i32, i32, i32
  }
}

module attributes {stable_mosaic.version = 11 : i64} {
  func.func @_ffn_res_ln_kernel(%arg0: i32, %arg1: i32, %arg2: memref<16x32xf32, #tpu.memory_space<vmem>>, %arg3: memref<32x512xf32, #tpu.memory_space<vmem>>, %arg4: memref<1x512xf32, #tpu.memory_space<vmem>>, %arg5: memref<512x32xf32, #tpu.memory_space<vmem>>, %arg6: memref<1x32xf32, #tpu.memory_space<vmem>>, %arg7: memref<1x32xf32, #tpu.memory_space<vmem>>, %arg8: memref<1x32xf32, #tpu.memory_space<vmem>>, %arg9: memref<16x32xf32, #tpu.memory_space<vmem>>, %arg10: memref<16x32xf32, #tpu.memory_space<vmem>>) attributes {dimension_semantics = [#tpu.dimension_semantics<parallel>, #tpu.dimension_semantics<arbitrary>], iteration_bounds = array<i64: 1, 4>, scalar_prefetch = 0 : i64, scratch_operands = 1 : i64, tpu.core_type = #tpu.core_type<tc>, window_params = [{transform_indices = @transform_0, window_bounds = array<i64: 16, 32>}, {transform_indices = @transform_1, window_bounds = array<i64: 32, 512>}, {transform_indices = @transform_2, window_bounds = array<i64: 1, 512>}, {transform_indices = @transform_3, window_bounds = array<i64: 512, 32>}, {pipeline_mode = #tpu.pipeline_mode<synchronous>, transform_indices = @transform_4, window_bounds = array<i64: 1, 32>}, {pipeline_mode = #tpu.pipeline_mode<synchronous>, transform_indices = @transform_5, window_bounds = array<i64: 1, 32>}, {pipeline_mode = #tpu.pipeline_mode<synchronous>, transform_indices = @transform_6, window_bounds = array<i64: 1, 32>}, {transform_indices = @transform_7, window_bounds = array<i64: 16, 32>}]} {
    %c0_i32 = arith.constant 0 : i32
    %0 = arith.cmpi eq, %arg1, %c0_i32 : i32
    %1 = arith.extui %0 : i1 to i32
    %c0_i32_0 = arith.constant 0 : i32
    %2 = arith.cmpi ne, %1, %c0_i32_0 : i32
    scf.if %2 {
      %cst_15 = arith.constant 0.000000e+00 : f32
      %23 = vector.broadcast %cst_15 : f32 to vector<16x32xf32>
      %c0_16 = arith.constant 0 : index
      %c0_17 = arith.constant 0 : index
      %24 = vector.load %arg10[%c0_16, %c0_17] : memref<16x32xf32, #tpu.memory_space<vmem>>, vector<16x32xf32>
      tpu.vector_store %arg10[%c0_16, %c0_17], %23 {strides = array<i32>} : memref<16x32xf32, #tpu.memory_space<vmem>>, vector<16x32xf32>,
    } else {
    }
    %c0 = arith.constant 0 : index
    %c0_1 = arith.constant 0 : index
    %3 = vector.load %arg2[%c0, %c0_1] : memref<16x32xf32, #tpu.memory_space<vmem>>, vector<16x32xf32>
    %c0_2 = arith.constant 0 : index
    %c0_3 = arith.constant 0 : index
    %4 = vector.load %arg3[%c0_2, %c0_3] : memref<32x512xf32, #tpu.memory_space<vmem>>, vector<32x512xf32>
    %5 = arith.truncf %3 : vector<16x32xf32> to vector<16x32xbf16>
    %6 = arith.truncf %4 : vector<32x512xf32> to vector<32x512xbf16>
    %cst = arith.constant dense<0.000000e+00> : vector<16x512xf32>
    %7 = tpu.matmul %5, %6, %cst {dimension_numbers = #tpu.dot_dimension_numbers<[1], [0], [0], [1], [0, 0, 1, 1], [], []>} : vector<16x32xbf16>, vector<32x512xbf16>, vector<16x512xf32> -> vector<16x512xf32>
    %c0_4 = arith.constant 0 : index
    %c0_5 = arith.constant 0 : index
    %8 = vector.load %arg4[%c0_4, %c0_5] : memref<1x512xf32, #tpu.memory_space<vmem>>, vector<1x512xf32>
    %9 = vector.broadcast %8 : vector<1x512xf32> to vector<16x512xf32>
    %10 = arith.addf %7, %9 : vector<16x512xf32>
    %cst_6 = arith.constant 0.000000e+00 : f32
    %11 = vector.broadcast %cst_6 : f32 to vector<16x512xf32>
    %12 = arith.maximumf %10, %11 : vector<16x512xf32>
    %c0_7 = arith.constant 0 : index
    %c0_8 = arith.constant 0 : index
    %13 = vector.load %arg10[%c0_7, %c0_8] : memref<16x32xf32, #tpu.memory_space<vmem>>, vector<16x32xf32>
    %c0_9 = arith.constant 0 : index
    %c0_10 = arith.constant 0 : index
    %14 = vector.load %arg5[%c0_9, %c0_10] : memref<512x32xf32, #tpu.memory_space<vmem>>, vector<512x32xf32>
    %15 = arith.truncf %12 : vector<16x512xf32> to vector<16x512xbf16>
    %16 = arith.truncf %14 : vector<512x32xf32> to vector<512x32xbf16>
    %cst_11 = arith.constant dense<0.000000e+00> : vector<16x32xf32>
    %17 = tpu.matmul %15, %16, %cst_11 {dimension_numbers = #tpu.dot_dimension_numbers<[1], [0], [0], [1], [0, 0, 1, 1], [], []>} : vector<16x512xbf16>, vector<512x32xbf16>, vector<16x32xf32> -> vector<16x32xf32>
    %18 = arith.addf %13, %17 : vector<16x32xf32>
    %c0_12 = arith.constant 0 : index
    %c0_13 = arith.constant 0 : index
    %19 = vector.load %arg10[%c0_12, %c0_13] : memref<16x32xf32, #tpu.memory_space<vmem>>, vector<16x32xf32>
    tpu.vector_store %arg10[%c0_12, %c0_13], %18 {strides = array<i32>} : memref<16x32xf32, #tpu.memory_space<vmem>>, vector<16x32xf32>,
    %c3_i32 = arith.constant 3 : i32
    %20 = arith.cmpi eq, %arg1, %c3_i32 : i32
    %21 = arith.extui %20 : i1 to i32
    %c0_i32_14 = arith.constant 0 : i32
    %22 = arith.cmpi ne, %21, %c0_i32_14 : i32
    scf.if %22 {
      %c0_15 = arith.constant 0 : index
      %c0_16 = arith.constant 0 : index
      %23 = vector.load %arg10[%c0_15, %c0_16] : memref<16x32xf32, #tpu.memory_space<vmem>>, vector<16x32xf32>
      %c0_17 = arith.constant 0 : index
      %c0_18 = arith.constant 0 : index
      %24 = vector.load %arg6[%c0_17, %c0_18] : memref<1x32xf32, #tpu.memory_space<vmem>>, vector<1x32xf32>
      %25 = vector.broadcast %24 : vector<1x32xf32> to vector<16x32xf32>
      %26 = arith.addf %23, %25 : vector<16x32xf32>
      %c0_19 = arith.constant 0 : index
      %c0_20 = arith.constant 0 : index
      %27 = vector.load %arg2[%c0_19, %c0_20] : memref<16x32xf32, #tpu.memory_space<vmem>>, vector<16x32xf32>
      %28 = arith.addf %26, %27 : vector<16x32xf32>
      %cst_21 = arith.constant dense<0.000000e+00> : vector<16xf32>
      %29 = vector.multi_reduction <add>, %28, %cst_21 [1] : vector<16x32xf32> to vector<16xf32>
      %30 = vector.shape_cast %29 : vector<16xf32> to vector<16x1xf32>
      %cst_22 = arith.constant 3.200000e+01 : f32
      %31 = vector.broadcast %cst_22 : f32 to vector<16x1xf32>
      %32 = arith.divf %30, %31 : vector<16x1xf32>
      %33 = vector.broadcast %32 : vector<16x1xf32> to vector<16x32xf32>
      %34 = arith.subf %28, %33 : vector<16x32xf32>
      %35 = arith.mulf %34, %34 : vector<16x32xf32>
      %cst_23 = arith.constant dense<0.000000e+00> : vector<16xf32>
      %36 = vector.multi_reduction <add>, %35, %cst_23 [1] : vector<16x32xf32> to vector<16xf32>
      %37 = vector.shape_cast %36 : vector<16xf32> to vector<16x1xf32>
      %cst_24 = arith.constant 3.200000e+01 : f32
      %38 = vector.broadcast %cst_24 : f32 to vector<16x1xf32>
      %39 = arith.divf %37, %38 : vector<16x1xf32>
      %cst_25 = arith.constant 9.99999974E-6 : f32
      %40 = vector.broadcast %cst_25 : f32 to vector<16x1xf32>
      %41 = arith.addf %39, %40 : vector<16x1xf32>
      %42 = math.rsqrt %41 : vector<16x1xf32>
      %43 = vector.broadcast %42 : vector<16x1xf32> to vector<16x32xf32>
      %44 = arith.mulf %34, %43 : vector<16x32xf32>
      %c0_26 = arith.constant 0 : index
      %c0_27 = arith.constant 0 : index
      %45 = vector.load %arg7[%c0_26, %c0_27] : memref<1x32xf32, #tpu.memory_space<vmem>>, vector<1x32xf32>
      %46 = vector.broadcast %45 : vector<1x32xf32> to vector<16x32xf32>
      %47 = arith.mulf %44, %46 : vector<16x32xf32>
      %c0_28 = arith.constant 0 : index
      %c0_29 = arith.constant 0 : index
      %48 = vector.load %arg8[%c0_28, %c0_29] : memref<1x32xf32, #tpu.memory_space<vmem>>, vector<1x32xf32>
      %49 = vector.broadcast %48 : vector<1x32xf32> to vector<16x32xf32>
      %50 = arith.addf %47, %49 : vector<16x32xf32>
      %c0_30 = arith.constant 0 : index
      %c0_31 = arith.constant 0 : index
      %51 = vector.load %arg9[%c0_30, %c0_31] : memref<16x32xf32, #tpu.memory_space<vmem>>, vector<16x32xf32>
      tpu.vector_store %arg9[%c0_30, %c0_31], %50 {strides = array<i32>} : memref<16x32xf32, #tpu.memory_space<vmem>>, vector<16x32xf32>,
    } else {
    }
    return
  }
  func.func @transform_0(%arg0: i32, %arg1: i32) -> (i32, i32) {
    %c0_i32 = arith.constant 0 : i32
    %c0_i32_0 = arith.constant 0 : i32
    return %arg0, %c0_i32 : i32, i32
  }
  func.func @transform_1(%arg0: i32, %arg1: i32) -> (i32, i32) {
    %c0_i32 = arith.constant 0 : i32
    %c0_i32_0 = arith.constant 0 : i32
    return %c0_i32, %arg1 : i32, i32
  }
  func.func @transform_2(%arg0: i32, %arg1: i32) -> (i32, i32) {
    %c0_i32 = arith.constant 0 : i32
    %c0_i32_0 = arith.constant 0 : i32
    return %c0_i32, %arg1 : i32, i32
  }
  func.func @transform_3(%arg0: i32, %arg1: i32) -> (i32, i32) {
    %c0_i32 = arith.constant 0 : i32
    %c0_i32_0 = arith.constant 0 : i32
    return %arg1, %c0_i32 : i32, i32
  }
  func.func @transform_4(%arg0: i32, %arg1: i32) -> (i32, i32) {
    %c0_i32 = arith.constant 0 : i32
    %c0_i32_0 = arith.constant 0 : i32
    %c0_i32_1 = arith.constant 0 : i32
    return %c0_i32, %c0_i32_0 : i32, i32
  }
  func.func @transform_5(%arg0: i32, %arg1: i32) -> (i32, i32) {
    %c0_i32 = arith.constant 0 : i32
    %c0_i32_0 = arith.constant 0 : i32
    %c0_i32_1 = arith.constant 0 : i32
    return %c0_i32, %c0_i32_0 : i32, i32
  }
  func.func @transform_6(%arg0: i32, %arg1: i32) -> (i32, i32) {
    %c0_i32 = arith.constant 0 : i32
    %c0_i32_0 = arith.constant 0 : i32
    %c0_i32_1 = arith.constant 0 : i32
    return %c0_i32, %c0_i32_0 : i32, i32
  }
  func.func @transform_7(%arg0: i32, %arg1: i32) -> (i32, i32) {
    %c0_i32 = arith.constant 0 : i32
    %c0_i32_0 = arith.constant 0 : i32
    return %arg0, %c0_i32 : i32, i32
  }
}

module attributes {stable_mosaic.version = 11 : i64} {
  func.func @_ffn_res_ln_kernel(%arg0: i32, %arg1: i32, %arg2: memref<16x32xf32, #tpu.memory_space<vmem>>, %arg3: memref<32x512xf32, #tpu.memory_space<vmem>>, %arg4: memref<1x512xf32, #tpu.memory_space<vmem>>, %arg5: memref<512x32xf32, #tpu.memory_space<vmem>>, %arg6: memref<1x32xf32, #tpu.memory_space<vmem>>, %arg7: memref<1x32xf32, #tpu.memory_space<vmem>>, %arg8: memref<1x32xf32, #tpu.memory_space<vmem>>, %arg9: memref<16x32xf32, #tpu.memory_space<vmem>>, %arg10: memref<16x32xf32, #tpu.memory_space<vmem>>) attributes {dimension_semantics = [#tpu.dimension_semantics<parallel>, #tpu.dimension_semantics<arbitrary>], iteration_bounds = array<i64: 1, 4>, scalar_prefetch = 0 : i64, scratch_operands = 1 : i64, tpu.core_type = #tpu.core_type<tc>, window_params = [{transform_indices = @transform_0, window_bounds = array<i64: 16, 32>}, {transform_indices = @transform_1, window_bounds = array<i64: 32, 512>}, {transform_indices = @transform_2, window_bounds = array<i64: 1, 512>}, {transform_indices = @transform_3, window_bounds = array<i64: 512, 32>}, {pipeline_mode = #tpu.pipeline_mode<synchronous>, transform_indices = @transform_4, window_bounds = array<i64: 1, 32>}, {pipeline_mode = #tpu.pipeline_mode<synchronous>, transform_indices = @transform_5, window_bounds = array<i64: 1, 32>}, {pipeline_mode = #tpu.pipeline_mode<synchronous>, transform_indices = @transform_6, window_bounds = array<i64: 1, 32>}, {transform_indices = @transform_7, window_bounds = array<i64: 16, 32>}]} {
    %c0_i32 = arith.constant 0 : i32
    %0 = arith.cmpi eq, %arg1, %c0_i32 : i32
    %1 = arith.extui %0 : i1 to i32
    %c0_i32_0 = arith.constant 0 : i32
    %2 = arith.cmpi ne, %1, %c0_i32_0 : i32
    scf.if %2 {
      %cst_15 = arith.constant 0.000000e+00 : f32
      %23 = vector.broadcast %cst_15 : f32 to vector<16x32xf32>
      %c0_16 = arith.constant 0 : index
      %c0_17 = arith.constant 0 : index
      %24 = vector.load %arg10[%c0_16, %c0_17] : memref<16x32xf32, #tpu.memory_space<vmem>>, vector<16x32xf32>
      tpu.vector_store %arg10[%c0_16, %c0_17], %23 {strides = array<i32>} : memref<16x32xf32, #tpu.memory_space<vmem>>, vector<16x32xf32>,
    } else {
    }
    %c0 = arith.constant 0 : index
    %c0_1 = arith.constant 0 : index
    %3 = vector.load %arg2[%c0, %c0_1] : memref<16x32xf32, #tpu.memory_space<vmem>>, vector<16x32xf32>
    %c0_2 = arith.constant 0 : index
    %c0_3 = arith.constant 0 : index
    %4 = vector.load %arg3[%c0_2, %c0_3] : memref<32x512xf32, #tpu.memory_space<vmem>>, vector<32x512xf32>
    %5 = arith.truncf %3 : vector<16x32xf32> to vector<16x32xbf16>
    %6 = arith.truncf %4 : vector<32x512xf32> to vector<32x512xbf16>
    %cst = arith.constant dense<0.000000e+00> : vector<16x512xf32>
    %7 = tpu.matmul %5, %6, %cst {dimension_numbers = #tpu.dot_dimension_numbers<[1], [0], [0], [1], [0, 0, 1, 1], [], []>} : vector<16x32xbf16>, vector<32x512xbf16>, vector<16x512xf32> -> vector<16x512xf32>
    %c0_4 = arith.constant 0 : index
    %c0_5 = arith.constant 0 : index
    %8 = vector.load %arg4[%c0_4, %c0_5] : memref<1x512xf32, #tpu.memory_space<vmem>>, vector<1x512xf32>
    %9 = vector.broadcast %8 : vector<1x512xf32> to vector<16x512xf32>
    %10 = arith.addf %7, %9 : vector<16x512xf32>
    %cst_6 = arith.constant 0.000000e+00 : f32
    %11 = vector.broadcast %cst_6 : f32 to vector<16x512xf32>
    %12 = arith.maximumf %10, %11 : vector<16x512xf32>
    %c0_7 = arith.constant 0 : index
    %c0_8 = arith.constant 0 : index
    %13 = vector.load %arg10[%c0_7, %c0_8] : memref<16x32xf32, #tpu.memory_space<vmem>>, vector<16x32xf32>
    %c0_9 = arith.constant 0 : index
    %c0_10 = arith.constant 0 : index
    %14 = vector.load %arg5[%c0_9, %c0_10] : memref<512x32xf32, #tpu.memory_space<vmem>>, vector<512x32xf32>
    %15 = arith.truncf %12 : vector<16x512xf32> to vector<16x512xbf16>
    %16 = arith.truncf %14 : vector<512x32xf32> to vector<512x32xbf16>
    %cst_11 = arith.constant dense<0.000000e+00> : vector<16x32xf32>
    %17 = tpu.matmul %15, %16, %cst_11 {dimension_numbers = #tpu.dot_dimension_numbers<[1], [0], [0], [1], [0, 0, 1, 1], [], []>} : vector<16x512xbf16>, vector<512x32xbf16>, vector<16x32xf32> -> vector<16x32xf32>
    %18 = arith.addf %13, %17 : vector<16x32xf32>
    %c0_12 = arith.constant 0 : index
    %c0_13 = arith.constant 0 : index
    %19 = vector.load %arg10[%c0_12, %c0_13] : memref<16x32xf32, #tpu.memory_space<vmem>>, vector<16x32xf32>
    tpu.vector_store %arg10[%c0_12, %c0_13], %18 {strides = array<i32>} : memref<16x32xf32, #tpu.memory_space<vmem>>, vector<16x32xf32>,
    %c3_i32 = arith.constant 3 : i32
    %20 = arith.cmpi eq, %arg1, %c3_i32 : i32
    %21 = arith.extui %20 : i1 to i32
    %c0_i32_14 = arith.constant 0 : i32
    %22 = arith.cmpi ne, %21, %c0_i32_14 : i32
    scf.if %22 {
      %c0_15 = arith.constant 0 : index
      %c0_16 = arith.constant 0 : index
      %23 = vector.load %arg10[%c0_15, %c0_16] : memref<16x32xf32, #tpu.memory_space<vmem>>, vector<16x32xf32>
      %c0_17 = arith.constant 0 : index
      %c0_18 = arith.constant 0 : index
      %24 = vector.load %arg6[%c0_17, %c0_18] : memref<1x32xf32, #tpu.memory_space<vmem>>, vector<1x32xf32>
      %25 = vector.broadcast %24 : vector<1x32xf32> to vector<16x32xf32>
      %26 = arith.addf %23, %25 : vector<16x32xf32>
      %c0_19 = arith.constant 0 : index
      %c0_20 = arith.constant 0 : index
      %27 = vector.load %arg2[%c0_19, %c0_20] : memref<16x32xf32, #tpu.memory_space<vmem>>, vector<16x32xf32>
      %28 = arith.addf %26, %27 : vector<16x32xf32>
      %cst_21 = arith.constant dense<0.000000e+00> : vector<16xf32>
      %29 = vector.multi_reduction <add>, %28, %cst_21 [1] : vector<16x32xf32> to vector<16xf32>
      %30 = vector.shape_cast %29 : vector<16xf32> to vector<16x1xf32>
      %cst_22 = arith.constant 3.200000e+01 : f32
      %31 = vector.broadcast %cst_22 : f32 to vector<16x1xf32>
      %32 = arith.divf %30, %31 : vector<16x1xf32>
      %33 = vector.broadcast %32 : vector<16x1xf32> to vector<16x32xf32>
      %34 = arith.subf %28, %33 : vector<16x32xf32>
      %35 = arith.mulf %34, %34 : vector<16x32xf32>
      %cst_23 = arith.constant dense<0.000000e+00> : vector<16xf32>
      %36 = vector.multi_reduction <add>, %35, %cst_23 [1] : vector<16x32xf32> to vector<16xf32>
      %37 = vector.shape_cast %36 : vector<16xf32> to vector<16x1xf32>
      %cst_24 = arith.constant 3.200000e+01 : f32
      %38 = vector.broadcast %cst_24 : f32 to vector<16x1xf32>
      %39 = arith.divf %37, %38 : vector<16x1xf32>
      %cst_25 = arith.constant 9.99999974E-6 : f32
      %40 = vector.broadcast %cst_25 : f32 to vector<16x1xf32>
      %41 = arith.addf %39, %40 : vector<16x1xf32>
      %42 = math.rsqrt %41 : vector<16x1xf32>
      %43 = vector.broadcast %42 : vector<16x1xf32> to vector<16x32xf32>
      %44 = arith.mulf %34, %43 : vector<16x32xf32>
      %c0_26 = arith.constant 0 : index
      %c0_27 = arith.constant 0 : index
      %45 = vector.load %arg7[%c0_26, %c0_27] : memref<1x32xf32, #tpu.memory_space<vmem>>, vector<1x32xf32>
      %46 = vector.broadcast %45 : vector<1x32xf32> to vector<16x32xf32>
      %47 = arith.mulf %44, %46 : vector<16x32xf32>
      %c0_28 = arith.constant 0 : index
      %c0_29 = arith.constant 0 : index
      %48 = vector.load %arg8[%c0_28, %c0_29] : memref<1x32xf32, #tpu.memory_space<vmem>>, vector<1x32xf32>
      %49 = vector.broadcast %48 : vector<1x32xf32> to vector<16x32xf32>
      %50 = arith.addf %47, %49 : vector<16x32xf32>
      %c0_30 = arith.constant 0 : index
      %c0_31 = arith.constant 0 : index
      %51 = vector.load %arg9[%c0_30, %c0_31] : memref<16x32xf32, #tpu.memory_space<vmem>>, vector<16x32xf32>
      tpu.vector_store %arg9[%c0_30, %c0_31], %50 {strides = array<i32>} : memref<16x32xf32, #tpu.memory_space<vmem>>, vector<16x32xf32>,
    } else {
    }
    return
  }
  func.func @transform_0(%arg0: i32, %arg1: i32) -> (i32, i32) {
    %c0_i32 = arith.constant 0 : i32
    %c0_i32_0 = arith.constant 0 : i32
    return %arg0, %c0_i32 : i32, i32
  }
  func.func @transform_1(%arg0: i32, %arg1: i32) -> (i32, i32) {
    %c0_i32 = arith.constant 0 : i32
    %c0_i32_0 = arith.constant 0 : i32
    return %c0_i32, %arg1 : i32, i32
  }
  func.func @transform_2(%arg0: i32, %arg1: i32) -> (i32, i32) {
    %c0_i32 = arith.constant 0 : i32
    %c0_i32_0 = arith.constant 0 : i32
    return %c0_i32, %arg1 : i32, i32
  }
  func.func @transform_3(%arg0: i32, %arg1: i32) -> (i32, i32) {
    %c0_i32 = arith.constant 0 : i32
    %c0_i32_0 = arith.constant 0 : i32
    return %arg1, %c0_i32 : i32, i32
  }
  func.func @transform_4(%arg0: i32, %arg1: i32) -> (i32, i32) {
    %c0_i32 = arith.constant 0 : i32
    %c0_i32_0 = arith.constant 0 : i32
    %c0_i32_1 = arith.constant 0 : i32
    return %c0_i32, %c0_i32_0 : i32, i32
  }
  func.func @transform_5(%arg0: i32, %arg1: i32) -> (i32, i32) {
    %c0_i32 = arith.constant 0 : i32
    %c0_i32_0 = arith.constant 0 : i32
    %c0_i32_1 = arith.constant 0 : i32
    return %c0_i32, %c0_i32_0 : i32, i32
  }
  func.func @transform_6(%arg0: i32, %arg1: i32) -> (i32, i32) {
    %c0_i32 = arith.constant 0 : i32
    %c0_i32_0 = arith.constant 0 : i32
    %c0_i32_1 = arith.constant 0 : i32
    return %c0_i32, %c0_i32_0 : i32, i32
  }
  func.func @transform_7(%arg0: i32, %arg1: i32) -> (i32, i32) {
    %c0_i32 = arith.constant 0 : i32
    %c0_i32_0 = arith.constant 0 : i32
    return %arg0, %c0_i32 : i32, i32
  }
}

</mosaic_0001>

<bundles_post_ra>
// kernel: encoder_forward.8
= control target key start
LH: loop header
LB: loop body
LE: loop exit
PB: predicated region body
PF: predicated region fallthrough
CT: control target
= control target key end

     0   :  { %vm19_vm0 = vcmask 785408   ;;  %v76_v3 = vmov 0.0   ;;  %vm33_vm1 = vcmask 261120   ;;  %s130_s1 = inlined_call_operand.vmem [shape: f32[32,96], index: 1, kind: input, shape index: {}]   ;;  %s131_s0 = inlined_call_operand.vmem [shape: f32[16,32], index: 0, kind: input, shape index: {}]   ;;  %s132_s2 = inlined_call_operand.vmem [shape: f32[1,96], index: 2, kind: input, shape index: {}]   ;;  %s133_s3 = inlined_call_operand.vmem [shape: f32[16,96], index: 3, kind: output, shape index: {}]  }
   0x1   :  { %v28_v0 = vld [vmem:[%s130_s1 + $0x10] sm:$0xff]  ;;  %v29_v1 = vld [vmem:[%s130_s1 + $0x18] sm:$0xff]  ;;  %v26_v2 = vld [vmem:[%s130_s1] sm:$0xff]  ;;  %20 = vst.msk [vmem:[#allocation2] sm:$0xff] %vm19_vm0, %v76_v3 }
   0x2   :  { %v32_v4 = vpack.c.bf16 %v29_v1, %v28_v0  ;;  %v27_v5 = vld [vmem:[%s130_s1 + $0x8] sm:$0xff]  ;;  %21 = vst.msk [vmem:[#allocation2 + $0x8] sm:$0xff] %vm19_vm0, %v76_v3  ;;  %v24_v7 = vld [vmem:[%s131_s0] sm:$0xff] }
   0x3   :  { %v31_v6 = vpack.c.bf16 %v27_v5, %v26_v2  ;;  %v25_v8 = vld [vmem:[%s131_s0 + $0x8] sm:$0xff]  ;;  %v75_v14 = vld [vmem:[%s132_s2] ss:$0 sm:$0xff] }
   0x4   :  { %43 = vmatpush.bf16.msra.mxu0 %v32_v4  ;;  %v30_v9 = vpack.c.bf16 %v25_v8, %v24_v7 }
   0x8   :  { %44 = vmatpush.bf16.msra.mxu0 %v31_v6  ;;  %v22_v10 = vld [vmem:[#allocation2] sm:$0xff] }
   0x9   :  { %v23_v13 = vld [vmem:[#allocation2 + $0x8] sm:$0xff] }
   0xb   :  { %73 = vmatmul.msk.bf16.vlgmr.msra.gmra.mxu0 %vm33_vm1, %v30_v9 }
  0x88   :  { %v46_v11 = vpop.f32.mrf.mxu0 }
  0x89   :  { %v51_v12 = vadd.f32 %v46_v11, %v22_v10 }
  0x8b   :  { %54 = vst.msk [vmem:[#allocation2] sm:$0xff] %vm19_vm0, %v51_v12 }
  0x90   :  { %v48_v15 = vpop.f32.mrf.mxu0 }
  0x91   :  { %v52_v16 = vadd.f32 %v48_v15, %v23_v13 }
  0x92   :  { %v59_v17 = vld [vmem:[#allocation2] sm:$0xff] }
  0x93   :  { %v65_v18 = vadd.f32 %v75_v14, %v59_v17  ;;  %55 = vst.msk [vmem:[#allocation2 + $0x8] sm:$0xff] %vm19_vm0, %v52_v16 }
  0x95   :  { %67 = vst.msk [vmem:[%s133_s3] sm:$0xff] %vm19_vm0, %v65_v18 }
  0x9a   :  { %v60_v19 = vld [vmem:[#allocation2 + $0x8] sm:$0xff] }
  0x9b   :  { %v66_v20 = vadd.f32 %v75_v14, %v60_v19 }
  0x9d   :  { %68 = vst.msk [vmem:[%s133_s3 + $0x8] sm:$0xff] %vm19_vm0, %v66_v20 }

// kernel: encoder_forward.10
= control target key start
LH: loop header
LB: loop body
LE: loop exit
PB: predicated region body
PF: predicated region fallthrough
CT: control target
= control target key end

     0   :  { %vm28_vm0 = vcmask 261120   ;;  %v160_v3 = vmov 0.0   ;;  %v161_v27 = vmov 32.0   ;;  %s247_s1 = inlined_call_operand.vmem [shape: f32[32,32], index: 1, kind: input, shape index: {}]   ;;  %s248_s0 = inlined_call_operand.vmem [shape: f32[16,32], index: 0, kind: input, shape index: {}]   ;;  %s249_s2 = inlined_call_operand.vmem [shape: f32[1,32], index: 2, kind: input, shape index: {}]   ;;  %s250_s3 = inlined_call_operand.vmem [shape: f32[16,32], index: 3, kind: input, shape index: {}]   ;;  %s251_s4 = inlined_call_operand.vmem [shape: f32[1,32], index: 4, kind: input, shape index: {}]   ;;  %s252_s5 = inlined_call_operand.vmem [shape: f32[1,32], index: 5, kind: input, shape index: {}]   ;;  %s253_s6 = inlined_call_operand.vmem [shape: f32[16,32], index: 6, kind: output, shape index: {}]  }
   0x1   :  { %v37_v0 = vld [vmem:[%s247_s1 + $0x10] sm:$0xff]  ;;  %v38_v1 = vld [vmem:[%s247_s1 + $0x18] sm:$0xff]  ;;  %v35_v2 = vld [vmem:[%s247_s1] sm:$0xff]  ;;  %29 = vst.msk [vmem:[#allocation2] sm:$0xff] %vm28_vm0, %v160_v3  ;;  %154 = vrcp.f32 %v161_v27 }
   0x2   :  { %v41_v4 = vpack.c.bf16 %v38_v1, %v37_v0  ;;  %v36_v5 = vld [vmem:[%s247_s1 + $0x8] sm:$0xff]  ;;  %30 = vst.msk [vmem:[#allocation2 + $0x8] sm:$0xff] %vm28_vm0, %v160_v3  ;;  %v33_v7 = vld [vmem:[%s248_s0] sm:$0xff] }
   0x3   :  { %v40_v6 = vpack.c.bf16 %v36_v5, %v35_v2  ;;  %v34_v8 = vld [vmem:[%s248_s0 + $0x8] sm:$0xff]  ;;  %v151_v14 = vld [vmem:[%s249_s2] ss:$0 sm:$0xff] }
   0x4   :  { %52 = vmatpush.bf16.msra.mxu0 %v41_v4  ;;  %v39_v9 = vpack.c.bf16 %v34_v8, %v33_v7  ;;  %v75_v18 = vld [vmem:[%s250_s3] sm:$0xff]  ;;  %v76_v23 = vld [vmem:[%s250_s3 + $0x8] sm:$0xff] }
   0x5   :  { %v152_v58 = vld [vmem:[%s251_s4] ss:$0 sm:$0xff] }
   0x6   :  { %v153_v61 = vld [vmem:[%s252_s5] ss:$0 sm:$0xff] }
   0x7   :  { %v155_v28 = vpop.eup %154 }
   0x8   :  { %53 = vmatpush.bf16.msra.mxu0 %v40_v6  ;;  %v31_v10 = vld [vmem:[#allocation2] sm:$0xff]  ;;  %v86_v29 = vmul.f32 32.0, %v155_v28  ;;  %vm90_vm1 = vweird.f32 %v155_v28 }
   0x9   :  { %v32_v13 = vld [vmem:[#allocation2 + $0x8] sm:$0xff] }
   0xa   :  { %v87_v30 = vsub.f32 1.0, %v86_v29 }
   0xb   :  { %148 = vmatmul.msk.bf16.vlgmr.msra.gmra.mxu0 %vm28_vm0, %v39_v9 }
   0xc   :  { %v88_v31 = vmul.f32 %v155_v28, %v87_v30 }
   0xe   :  { %v89_v32 = vadd.f32 %v155_v28, %v88_v31 }
  0x10   :  { %v91_v33 = vsel %vm90_vm1, %v155_v28, %v89_v32 }
  0x88   :  { %v55_v11 = vpop.f32.mrf.mxu0 }
  0x89   :  { %v60_v12 = vadd.f32 %v55_v11, %v31_v10 }
  0x8b   :  { %62 = vst.msk [vmem:[#allocation2] sm:$0xff] %vm28_vm0, %v60_v12 }
  0x90   :  { %v57_v15 = vpop.f32.mrf.mxu0 }
  0x91   :  { %v61_v16 = vadd.f32 %v57_v15, %v32_v13 }
  0x92   :  { %v67_v17 = vld [vmem:[#allocation2] sm:$0xff] }
  0x93   :  { %63 = vst.msk [vmem:[#allocation2 + $0x8] sm:$0xff] %vm28_vm0, %v61_v16  ;;  %v73_v19 = vadd.f32 %v151_v14, %v67_v17 }
  0x95   :  { %v77_v20 = vadd.f32 %v75_v18, %v73_v19 }
  0x97   :  { %v79_v21 = vsel %vm28_vm0, %v77_v20, 0.0 }
  0x98   :  { %80 = vadd.xlane.f32.xlu0 %v79_v21 }
  0x9a   :  { %v68_v22 = vld [vmem:[#allocation2 + $0x8] sm:$0xff] }
  0x9b   :  { %v74_v24 = vadd.f32 %v151_v14, %v68_v22 }
  0x9d   :  { %v78_v25 = vadd.f32 %v76_v23, %v74_v24 }
  0x9f   :  { %v82_v26 = vsel %vm28_vm0, %v78_v25, 0.0 }
  0xa0   :  { %83 = vadd.xlane.f32.xlu0 %v82_v26 }
 0x10b   :  { %v81_v34 = vpop.xlane.xlu0 %80 }
 0x10c   :  { %v92_v35 = vmul.f32 %v91_v33, %v81_v34 }
 0x10e   :  { %v94_v36 = vsub.f32 %v77_v20, %v92_v35 }
 0x110   :  { %v96_v37 = vmul.f32 %v94_v36, %v94_v36 }
 0x112   :  { %v98_v38 = vsel %vm28_vm0, %v96_v37, 0.0 }
 0x113   :  { %99 = vadd.xlane.f32.xlu1 %v98_v38  ;;  %v84_v39 = vpop.xlane.xlu0 %83 }
 0x114   :  { %v93_v40 = vmul.f32 %v91_v33, %v84_v39 }
 0x116   :  { %v95_v41 = vsub.f32 %v78_v25, %v93_v40 }
 0x118   :  { %v97_v42 = vmul.f32 %v95_v41, %v95_v41 }
 0x11a   :  { %v101_v43 = vsel %vm28_vm0, %v97_v42, 0.0 }
 0x11b   :  { %102 = vadd.xlane.f32.xlu1 %v101_v43 }
 0x186   :  { %v100_v44 = vpop.xlane.xlu1 %99 }
 0x187   :  { %v104_v45 = vmul.f32 %v100_v44, %v91_v33 }
 0x189   :  { %v106_v46 = vadd.f32 1e-05, %v104_v45 }
 0x18b   :  { %156 = vrsqrt.f32 %v106_v46  ;;  %vm114_vm3 = vweird.f32 %v106_v46 }
 0x18e   :  { %v103_v47 = vpop.xlane.xlu1 %102 }
 0x18f   :  { %v105_v48 = vmul.f32 %v103_v47, %v91_v33 }
 0x191   :  { %v157_v49 = vpop.eup %156  ;;  %v107_v50 = vadd.f32 1e-05, %v105_v48 }
 0x192   :  { %v109_v51 = vmul.f32 %v157_v49, %v106_v46  ;;  %vm115_vm2 = vweird.f32 %v157_v49 }
 0x193   :  { %158 = vrsqrt.f32 %v107_v50  ;;  %vm116_vm4 = vmor %vm114_vm3, %vm115_vm2  ;;  %vm124_vm6 = vweird.f32 %v107_v50 }
 0x194   :  { %v110_v52 = vmul.f32 %v157_v49, %v109_v51 }
 0x196   :  { %v111_v53 = vmul.f32 0.5, %v110_v52 }
 0x198   :  { %v112_v54 = vsub.f32 1.5, %v111_v53 }
 0x199   :  { %v159_v55 = vpop.eup %158 }
 0x19a   :  { %v113_v56 = vmul.f32 %v157_v49, %v112_v54  ;;  %v119_v57 = vmul.f32 %v159_v55, %v107_v50  ;;  %vm125_vm5 = vweird.f32 %v159_v55 }
 0x19b   :  { %vm126_vm7 = vmor %vm124_vm6, %vm125_vm5 }
 0x19c   :  { %v117_v59 = vsel %vm116_vm4, %v157_v49, %v113_v56  ;;  %v120_v60 = vmul.f32 %v159_v55, %v119_v57 }
 0x19d   :  { %v128_v62 = vmul.f32 %v117_v59, %v94_v36 }
 0x19e   :  { %v121_v63 = vmul.f32 0.5, %v120_v60 }
 0x19f   :  { %v134_v0 = vmul.f32 %v152_v58, %v128_v62 }
 0x1a0   :  { %v122_v1 = vsub.f32 1.5, %v121_v63 }
 0x1a1   :  { %v140_v2 = vadd.f32 %v153_v61, %v134_v0 }
 0x1a2   :  { %v123_v3 = vmul.f32 %v159_v55, %v122_v1 }
 0x1a3   :  { %142 = vst.msk [vmem:[%s253_s6] sm:$0xff] %vm28_vm0, %v140_v2 }
 0x1a4   :  { %v127_v4 = vsel %vm126_vm7, %v159_v55, %v123_v3 }
 0x1a5   :  { %v129_v5 = vmul.f32 %v127_v4, %v95_v41 }
 0x1a7   :  { %v135_v6 = vmul.f32 %v152_v58, %v129_v5 }
 0x1a9   :  { %v141_v7 = vadd.f32 %v153_v61, %v135_v6 }
 0x1ab   :  { %143 = vst.msk [vmem:[%s253_s6 + $0x8] sm:$0xff] %vm28_vm0, %v141_v7 }

// kernel: encoder_forward.9
= control target key start
LH: loop header
LB: loop body
LE: loop exit
PB: predicated region body
PF: predicated region fallthrough
CT: control target
= control target key end

     0   :  { %s503_s6 = smov 0   ;;  %s569_s0 = inlined_call_operand.vmem [shape: f32[2,8,96], index: 0, kind: input, shape index: {}]   ;;  %s570_s1 = inlined_call_operand.vmem [shape: f32[2,8,32], index: 1, kind: output, shape index: {}]  }
   0x1 LB: > { %s416_s7 = sadd.s32 4294967295, %s477_s6   ;;  %p420_p0 = scmp.ge.s32.totalorder %s477_s6, 1  ;;  %s477_s6 = sphi %s503_s6, %s11_s6  }
   0x2   : > { %p86_p1 = scmp.lt.s32.totalorder %s477_s6, 3 }
   0x4   : > { %p87_p2 = pnand %p420_p0, %p86_p1 }
   0x5   : > { %p104_p3 = scmp.lt.s32.totalorder (!%p87_p2), %s416_s7, 1  ;;  %s479_s12 = smov (!%p87_p2), 96  }
   0x6   : > { %90 = sbr.rel (%p87_p2) target bundleno = 1193 (0x4a9), region = 24  ;;  %s480_s13 = smov (!%p87_p2), 88  }
   0x7   : > { %s481_s14 = smov (!%p87_p2), 120   ;;  %s482_s15 = smov (!%p87_p2), 64  }
   0x8   : > { %s483_s16 = smov (!%p87_p2), 80   ;;  %s484_s17 = smov (!%p87_p2), 72  }
   0x9   : > { %s485_s18 = smov (!%p87_p2), 112   ;;  %s486_s19 = smov (!%p87_p2), 104  }
   0xa   : > { %s487_s20 = smov (!%p87_p2), 56   ;;  %s488_s21 = smov (!%p87_p2), 40  }
   0xb   : > { %s572_s7 = smov (!%p104_p3, %s416_s7), 1  ;;  %vm118_vm0 = vcmask 64512   ;;  %vm156_vm1 = vcmask 1043456   ;;  %s489_s22 = smov 48   ;;  %vm357_vm2 = vcmask 130048   ;;  %vm359_vm3 = vcmask 195584  }
   0xc   : > { %s421_s8 = sshll.u32 %s572_s7, 3  ;;  %s490_s23 = smov 8   ;;  %vm361_vm4 = vcmask 261120  }
   0xd   : > { %s107_s11 = scalar_lea.vmem %s569_s0, %s421_s8  ;;  %s491_s24 = smov 16  }
   0xe   : > { %v113_v0 = vld [vmem:[%s107_s11] sm:$0xff]  ;;  %s492_s25 = smov 24   ;;  %s111_s28 = scalar_lea.vmem %s570_s1, %s421_s8 }
   0xf   : > { %v519_v1 = vpack.c.bf16 %v113_v0, %v113_v0 }
  0x11   : > { %116 = vrot.lane.b32.xlu0 %v519_v1, %s479_s12  ;;  %175 = vrot.lane.b32.xlu1 %v519_v1, %s480_s13 }
  0x12   : > { %173 = vrot.lane.b32.xlu2 %v519_v1, %s481_s14 }
  0x1a   : > { %151 = vrot.lane.b32.xlu2 %v519_v1, %s482_s15 }
  0x22   : > { %232 = vrot.lane.b32.xlu2 %v519_v1, %s483_s16 }
  0x2a   : > { %289 = vrot.lane.b32.xlu2 %v519_v1, %s484_s17 }
  0x32   : > { %230 = vrot.lane.b32.xlu2 %v519_v1, %s485_s18 }
  0x3a   : > { %287 = vrot.lane.b32.xlu2 %v519_v1, %s486_s19 }
  0x6c   : > { %v174_v6 = vpop.permute.xlu2 %173 }
  0x74   : > { %v152_v11 = vpop.permute.xlu2 %151 }
  0x75   : > { %v158_v16 = vsel %vm156_vm1, %v152_v11, 0 }
  0x76   : > { %167 = vmatpush.bf16.msra.mxu1 %v158_v16 }
  0x7c   : > { %v233_v12 = vpop.permute.xlu2 %232 }
  0x7d   : > { %v238_v14 = vsel %vm118_vm0, %v233_v12, 0 }
  0x7e   : > { %247 = vmatpush.bf16.xpose.msrb.mxu1 %v238_v14 }
  0x83   : > { %v117_v2 = vpop.permute.xlu0 %116  ;;  %v176_v4 = vpop.permute.xlu1 %175 }
  0x84   : > { %v123_v3 = vsel %vm118_vm0, %v117_v2, 0  ;;  %v181_v5 = vsel %vm118_vm0, %v176_v4, 0  ;;  %v290_v13 = vpop.permute.xlu2 %289 }
  0x85   : > { %132 = vmatpush.bf16.xpose.msra.mxu0 %v123_v3  ;;  %190 = vmatpush.bf16.xpose.msra.mxu2 %v181_v5  ;;  %v295_v15 = vsel %vm118_vm0, %v290_v13, 0 }
  0x8c   : > { %423 = vmatmul.msk.bf16.vlgmr.msra.gmra.mxu0 %vm118_vm0, %v519_v1  ;;  %425 = vmatmul.msk.bf16.vlgmr.msra.gmra.mxu2 %vm118_vm0, %v174_v6  ;;  %v231_v17 = vpop.permute.xlu2 %230 }
  0x8d   : > { %304 = vmatpush.bf16.xpose.msrb.mxu0 %v295_v15 }
  0x94   : > { %v288_v18 = vpop.permute.xlu2 %287 }
  0x9c   : > { %429 = vmatmul.msk.bf16.vlgmr.msrb.gmra.mxu0 %vm118_vm0, %v288_v18 }
 0x109   : > { %v134_v7 = vpop.f32.mrf.mxu0 }
 0x10a   : > { %v138_v8 = vmul.f32 0.35355338, %v134_v7 }
 0x10c   : > { %v139_v9 = vsel %vm118_vm0, %v138_v8, -inf }
 0x10d   : > { %140 = vmax.xlane.f32.xlu0 %v139_v9 }
 0x10f   : > { %v192_v19 = vpop.f32.mrf.mxu2 }
 0x110   : > { %v196_v20 = vmul.f32 0.35355338, %v192_v19 }
 0x111   : > { %v136_v10 = vpop.f32.mrf.mxu0 }
 0x112   : > { %v197_v22 = vsel %vm118_vm0, %v196_v20, -inf }
 0x113   : > { %198 = vmax.xlane.f32.xlu2 %v197_v22 }
 0x117   : > { %v194_v25 = vpop.f32.mrf.mxu2 }
 0x119   : > { %v306_v28 = vpop.f32.mrf.mxu0 }
 0x11a   : > { %v310_v29 = vmul.f32 0.35355338, %v306_v28 }
 0x11c   : > { %v311_v30 = vsel %vm118_vm0, %v310_v29, -inf }
 0x121   : > { %v308_v32 = vpop.f32.mrf.mxu0 }
 0x180   : > { %v141_v21 = vpop.xlane.xlu0 %140 }
 0x181   : > { %v142_v23 = vsub.f32 %v138_v8, %v141_v21 }
 0x183   : > { %v143_v24 = vmul.f32 1.442695, %v142_v23 }
 0x185   : > { %455 = vpow2.f32 %v143_v24 }
 0x186   : > { %v199_v37 = vpop.xlane.xlu2 %198 }
 0x187   : > { %v200_v39 = vsub.f32 %v196_v20, %v199_v37 }
 0x189   : > { %v201_v40 = vmul.f32 1.442695, %v200_v39 }
 0x18b   : > { %v456_v26 = vpop.eup %455 }
 0x18c   : > { %v145_v27 = vsel %vm118_vm0, %v456_v26, 0.0 }
 0x18d   : > { %146 = vadd.xlane.f32.xlu1 %v145_v27 }
 0x195   : > { %312 = vmax.xlane.f32.xlu1 %v311_v30 }
 0x1ae   : > { %209 = vrot.lane.b32.xlu1 %v519_v1, %s487_s20 }
 0x1b6   : > { %323 = vrot.lane.b32.xlu1 %v519_v1, %s488_s21 }
 0x200   : > { %v147_v31 = vpop.xlane.xlu1 %146 }
 0x201   : > { %457 = vrcp.f32 %v147_v31 }
 0x202   : > { %459 = vpow2.f32 %v201_v40 }
 0x207   : > { %v458_v33 = vpop.eup %457 }
 0x208   : > { %v149_v34 = vmul.f32 %v458_v33, %v456_v26  ;;  %v313_v41 = vpop.xlane.xlu1 %312  ;;  %v460_v47 = vpop.eup %459 }
 0x209   : > { %v314_v44 = vsub.f32 %v310_v29, %v313_v41  ;;  %v203_v49 = vsel %vm118_vm0, %v460_v47, 0.0 }
 0x20a   : > { %v150_v35 = vpack.c.bf16 %v149_v34, %v149_v34 }
 0x20b   : > { %v315_v46 = vmul.f32 1.442695, %v314_v44 }
 0x20c   : > { %424 = vmatmul.msk.bf16.vlgmr.msra.gmra.mxu1 %vm118_vm0, %v150_v35 }
 0x20d   : > { %461 = vpow2.f32 %v315_v46 }
 0x213   : > { %v462_v50 = vpop.eup %461 }
 0x214   : > { %v317_v51 = vsel %vm118_vm0, %v462_v50, 0.0 }
 0x21c   : > { %427 = vmatmul.msk.bf16.vlgmr.msrb.gmra.mxu1 %vm118_vm0, %v231_v17 }
 0x220   : > { %v210_v52 = vpop.permute.xlu1 %209 }
 0x221   : > { %v215_v53 = vsel %vm156_vm1, %v210_v52, 0 }
 0x222   : > { %224 = vmatpush.bf16.msra.mxu3 %v215_v53 }
 0x228   : > { %v324_v54 = vpop.permute.xlu1 %323 }
 0x229   : > { %v329_v55 = vsel %vm156_vm1, %v324_v54, 0 }
 0x22a   : > { %338 = vmatpush.bf16.msrb.mxu2 %v329_v55 }
 0x289   : > { %v546_v36 = vpop.f32.mrf.mxu1 }
 0x291   : > { %v171_v38 = vpop.f32.mrf.mxu1 }
 0x299   : > { %v249_v42 = vpop.f32.mrf.mxu1 }
 0x29a   : > { %v253_v43 = vmul.f32 0.35355338, %v249_v42 }
 0x29c   : > { %v254_v45 = vsel %vm118_vm0, %v253_v43, -inf }
 0x29d   : > { %255 = vmax.xlane.f32.xlu0 %v254_v45 }
 0x2a1   : > { %v251_v48 = vpop.f32.mrf.mxu1 }
 0x2a5   : > { %204 = vadd.xlane.f32.xlu0 %v203_v49 }
 0x2ad   : > { %318 = vadd.xlane.f32.xlu0 %v317_v51 }
 0x310   : > { %v256_v56 = vpop.xlane.xlu0 %255 }
 0x311   : > { %v257_v57 = vsub.f32 %v253_v43, %v256_v56 }
 0x313   : > { %v258_v58 = vmul.f32 1.442695, %v257_v57 }
 0x315   : > { %463 = vpow2.f32 %v258_v58 }
 0x318   : > { %v205_v59 = vpop.xlane.xlu0 %204 }
 0x319   : > { %465 = vrcp.f32 %v205_v59 }
 0x31b   : > { %v464_v60 = vpop.eup %463 }
 0x31c   : > { %v260_v61 = vsel %vm118_vm0, %v464_v60, 0.0 }
 0x31d   : > { %261 = vadd.xlane.f32.xlu0 %v260_v61 }
 0x31f   : > { %v466_v62 = vpop.eup %465 }
 0x320   : > { %v319_v63 = vpop.xlane.xlu0 %318  ;;  %v207_v0 = vmul.f32 %v466_v62, %v460_v47 }
 0x321   : > { %467 = vrcp.f32 %v319_v63 }
 0x322   : > { %v208_v2 = vpack.c.bf16 %v207_v0, %v207_v0 }
 0x324   : > { %426 = vmatmul.msk.bf16.vlgmr.msra.gmra.mxu3 %vm118_vm0, %v208_v2 }
 0x327   : > { %v468_v3 = vpop.eup %467 }
 0x328   : > { %v321_v4 = vmul.f32 %v468_v3, %v462_v50 }
 0x32a   : > { %v322_v5 = vpack.c.bf16 %v321_v4, %v321_v4 }
 0x32c   : > { %430 = vmatmul.msk.bf16.vlgmr.msrb.gmra.mxu2 %vm118_vm0, %v322_v5 }
 0x331   : > { %266 = vrot.lane.b32.xlu0 %v519_v1, %s489_s22 }
 0x390   : > { %v262_v6 = vpop.xlane.xlu0 %261 }
 0x391   : > { %469 = vrcp.f32 %v262_v6 }
 0x397   : > { %v470_v7 = vpop.eup %469 }
 0x398   : > { %v264_v8 = vmul.f32 %v470_v7, %v464_v60 }
 0x39a   : > { %v265_v11 = vpack.c.bf16 %v264_v8, %v264_v8 }
 0x3a3   : > { %v267_v9 = vpop.permute.xlu0 %266 }
 0x3a4   : > { %v272_v10 = vsel %vm156_vm1, %v267_v9, 0 }
 0x3a5   : > { %281 = vmatpush.bf16.msrb.mxu3 %v272_v10 }
 0x3a7   : > { %v226_v12 = vpop.f32.mrf.mxu3 }
 0x3a8   : > { %428 = vmatmul.msk.bf16.vlgmr.msrb.gmra.mxu3 %vm118_vm0, %v265_v11  ;;  %345 = vrot.lane.b32.xlu2 %v226_v12, %s490_s23 }
 0x3af   : > { %v228_v13 = vpop.f32.mrf.mxu3  ;;  %v340_v14 = vpop.f32.mrf.mxu2 }
 0x3b7   : > { %v342_v15 = vpop.f32.mrf.mxu2 }
 0x402   : > { %v346_v18 = vpop.permute.xlu2 %345 }
 0x403   : > { %v356_v19 = vsel %vm118_vm0, %v546_v36, %v346_v18 }
 0x42b   : > { %v283_v16 = vpop.f32.mrf.mxu3 }
 0x42c   : > { %349 = vrot.lane.b32.xlu1 %v283_v16, %s491_s24 }
 0x433   : > { %v285_v1 = vpop.f32.mrf.mxu3 }
 0x434   : > { %353 = vrot.lane.b32.xlu1 %v340_v14, %s492_s25 }
 0x49e   : > { %v350_v17 = vpop.permute.xlu1 %349 }
 0x49f   : > { %v358_v20 = vsel %vm357_vm2, %v356_v19, %v350_v17 }
 0x4a6   : > { %v354_v21 = vpop.permute.xlu1 %353 }
 0x4a7   : > { %v360_v22 = vsel %vm359_vm3, %v358_v20, %v354_v21 }
 0x4a8   : > { %362 = vst.msk [vmem:[%s111_s28] sm:$0xff] %vm361_vm4, %v360_v22 }
 0x4a9 PF: > { %s11_s6 = sadd.s32 1, %s477_s6  }
 0x4aa   : > { %p8_p4 = scmp.ge.s32.totalorder %s11_s6, 4  }
 0x4ac   :  { %10 = sbr.rel (!%p8_p4) target bundleno = 1 (0x1), region = 54 }

// kernel: encoder_forward.11
= control target key start
LH: loop header
LB: loop body
LE: loop exit
PB: predicated region body
PF: predicated region fallthrough
CT: control target
= control target key end

     0   :  { %s1022_s24 = smov 0   ;;  %s1024_s25 = smov 0   ;;  %s1242_s0 = inlined_call_operand.vmem [shape: f32[16,32], index: 0, kind: input, shape index: {}]   ;;  %s1243_s1 = inlined_call_operand.vmem [shape: f32[32,2048], index: 1, kind: input, shape index: {}]   ;;  %s1244_s2 = inlined_call_operand.vmem [shape: f32[1,2048], index: 2, kind: input, shape index: {}]   ;;  %s1245_s3 = inlined_call_operand.vmem [shape: f32[2048,32], index: 3, kind: input, shape index: {}]   ;;  %s1246_s4 = inlined_call_operand.vmem [shape: f32[1,32], index: 4, kind: input, shape index: {}]   ;;  %s1247_s5 = inlined_call_operand.vmem [shape: f32[1,32], index: 5, kind: input, shape index: {}]   ;;  %s1248_s6 = inlined_call_operand.vmem [shape: f32[1,32], index: 6, kind: input, shape index: {}]   ;;  %s1249_s7 = inlined_call_operand.vmem [shape: f32[16,32], index: 7, kind: output, shape index: {}]  }
   0x1   :  { %s1026_s26 = smov 0   ;;  %s1028_s27 = smov 0  }
   0x2   :  { %s1030_s28 = smov 0  }
   0x3 LB: > { %s26_s29 = sadd.s32 1, %s974_s27  ;;  %p69_p1 = scmp.ne.s32.totalorder %s966_s25, %s962_s24  ;;  %s978_s28 = sphi %s1030_s28, %s17_s28   ;;  %s974_s27 = sphi %s1028_s27, %s1253_s27   ;;  %s970_s26 = sphi %s1026_s26, %s1252_s26   ;;  %s966_s25 = sphi %s1024_s25, %s1251_s25   ;;  %s962_s24 = sphi %s1022_s24, %s1250_s24  }
   0x4   : > { %p27_p0 = scmp.ge.s32.totalorder %s26_s29, 4  ;;  %p70_p2 = scmp.eq.s32.totalorder %s978_s28, 0 }
   0x5   : > { %s62_s8 = sadd.s32 1, %s966_s25  ;;  %p869_p5 = scmp.ge.s32.totalorder %s978_s28, 4 }
   0x6   : > { %s1255_s29 = smov (%p27_p0, %s26_s29), 0  ;;  %p71_p3 = por %p70_p2, %p69_p1 }
   0x7   : > { %s59_s30 = ssub.s32 %s974_s27, %s1255_s29  ;;  %254 = sbr.rel (%p869_p5) target bundleno = 32 (0x20), region = 32 }
   0x8   : > { %p60_p4 = scmp.eq.s32.totalorder %s59_s30, 0 }
   0xa   : > { %s1057_s9 = scalar_select %p60_p4, %s966_s25, %s62_s8  }
   0xc   : > { %257 = sbr.rel (!%p71_p3) target bundleno = 32 (0x20), region = 36  ;;  %s259_s10 = sand.u32 (%p71_p3), 1, %s966_s25  }
   0xd   : > { %s888_s11 = sshll.u32 (%p71_p3), %s974_s27, 5  ;;  %s870_s12 = sshll.u32 (%p71_p3), %s259_s10, 7 }
   0xe   : > { %s1065_s15 = scalar_lea.vmem (%p71_p3), %s1243_s1, %s888_s11  ;;  %s261_s16 = scalar_lea.vmem (%p71_p3), [#allocation3], %s870_s12 }
   0xf   : > { %v277_v0 = vld [vmem:[%s1065_s15] sm:$0xff] (%p71_p3)  ;;  %v279_v1 = vld [vmem:[%s1065_s15 + $0x8] sm:$0xff] (%p71_p3)  ;;  %v281_v2 = vld [vmem:[%s1065_s15 + $0x10] sm:$0xff] (%p71_p3) }
  0x10   : > { %278 = vst [vmem:[%s261_s16] sm:$0xff] (%p71_p3), %v277_v0  ;;  %v283_v3 = vld [vmem:[%s1065_s15 + $0x18] sm:$0xff] (%p71_p3)  ;;  %v285_v4 = vld [vmem:[%s1065_s15 + $0x80] sm:$0xff] (%p71_p3)  ;;  %v287_v5 = vld [vmem:[%s1065_s15 + $0x88] sm:$0xff] (%p71_p3) }
  0x11   : > { %280 = vst [vmem:[%s261_s16 + $0x8] sm:$0xff] %v279_v1  ;;  %v289_v6 = vld [vmem:[%s1065_s15 + $0x90] sm:$0xff]  ;;  %v291_v7 = vld [vmem:[%s1065_s15 + $0x98] sm:$0xff]  ;;  %v293_v8 = vld [vmem:[%s1065_s15 + $0x100] sm:$0xff] }
  0x12   : > { %282 = vst [vmem:[%s261_s16 + $0x10] sm:$0xff] %v281_v2  ;;  %v295_v9 = vld [vmem:[%s1065_s15 + $0x108] sm:$0xff]  ;;  %v297_v10 = vld [vmem:[%s1065_s15 + $0x110] sm:$0xff]  ;;  %v299_v11 = vld [vmem:[%s1065_s15 + $0x118] sm:$0xff] }
  0x13   : > { %284 = vst [vmem:[%s261_s16 + $0x18] sm:$0xff] %v283_v3  ;;  %v301_v12 = vld [vmem:[%s1065_s15 + $0x180] sm:$0xff]  ;;  %v303_v13 = vld [vmem:[%s1065_s15 + $0x188] sm:$0xff]  ;;  %v305_v14 = vld [vmem:[%s1065_s15 + $0x190] sm:$0xff] }
  0x14   : > { %286 = vst [vmem:[%s261_s16 + $0x20] sm:$0xff] %v285_v4  ;;  %v307_v15 = vld [vmem:[%s1065_s15 + $0x198] sm:$0xff] }
  0x15   : > { %288 = vst [vmem:[%s261_s16 + $0x28] sm:$0xff] %v287_v5 }
  0x16   : > { %290 = vst [vmem:[%s261_s16 + $0x30] sm:$0xff] %v289_v6 }
  0x17   : > { %292 = vst [vmem:[%s261_s16 + $0x38] sm:$0xff] %v291_v7 }
  0x18   : > { %294 = vst [vmem:[%s261_s16 + $0x40] sm:$0xff] %v293_v8 }
  0x19   : > { %296 = vst [vmem:[%s261_s16 + $0x48] sm:$0xff] %v295_v9 }
  0x1a   : > { %298 = vst [vmem:[%s261_s16 + $0x50] sm:$0xff] %v297_v10 }
  0x1b   : > { %300 = vst [vmem:[%s261_s16 + $0x58] sm:$0xff] %v299_v11 }
  0x1c   : > { %302 = vst [vmem:[%s261_s16 + $0x60] sm:$0xff] %v301_v12 }
  0x1d   : > { %304 = vst [vmem:[%s261_s16 + $0x68] sm:$0xff] %v303_v13 }
  0x1e   : > { %306 = vst [vmem:[%s261_s16 + $0x70] sm:$0xff] %v305_v14 }
  0x1f   : > { %308 = vst [vmem:[%s261_s16 + $0x78] sm:$0xff] %v307_v15 }
  0x20 PF: > { %p873_p6 = scmp.ge.s32.totalorder %s978_s28, 1  ;;  %p330_p7 = scmp.lt.s32.totalorder %s978_s28, 5 }
  0x22   : > { %p331_p8 = pnand %p873_p6, %p330_p7 }
  0x23   : > { %s337_s17 = sand.u32 (!%p331_p8), 1, %s962_s24   ;;  %s875_s18 = sshll.u32 (!%p331_p8), %s970_s26, 2 }
  0x24   : > { %334 = sbr.rel (%p331_p8) target bundleno = 640 (0x280), region = 67  ;;  %s874_s19 = sshll.u32 (!%p331_p8), %s337_s17, 7 }
  0x25   : > { %p390_p9 = scmp.lt.s32.totalorder (!%p331_p8), %s875_s18, 15  ;;  %s876_s20 = sshll.u32 (!%p331_p8), %s970_s26, 6 }
  0x26   : > { %p395_p10 = scmp.lt.s32.totalorder (!%p331_p8), %s876_s20, 255  ;;  %s1099_s24 = scalar_lea.vmem (!%p331_p8), [#allocation3], %s874_s19 }
  0x27   : > { %p878_p11 = scmp.ne.s32.totalorder (!%p331_p8), %s970_s26, 0 }
  0x29   : > { %s1257_s18 = smov (!%p390_p9, %s875_s18), 15  ;;  %s1259_s20 = smov (!%p395_p10, %s876_s20), 255 }
  0x2a   : > { %s392_s23 = scalar_lea.vmem %s1244_s2, %s1257_s18  ;;  %s877_s30 = sshll.u32 %s1259_s20, 3 }
  0x2b   : > { %s1097_s11 = scalar_lea.vmem %s1245_s3, %s877_s30  ;;  %410 = sbr.rel (%p878_p11) target bundleno = 51 (0x33), region = 75 }
  0x30   : > { %vm411_vm0 = vcmask 261120   ;;  %v980_v16 = vmov 0.0  }
  0x31   : > { %412 = vst.msk [vmem:[#allocation2] sm:$0xff] %vm411_vm0, %v980_v16 }
  0x32   : > { %413 = vst.msk [vmem:[#allocation2 + $0x8] sm:$0xff] %vm411_vm0, %v980_v16 }
  0x33 PF: > { %v424_v17 = vld [vmem:[%s1099_s24 + $0x40] sm:$0xff]  ;;  %v425_v19 = vld [vmem:[%s1099_s24 + $0x48] sm:$0xff]  ;;  %v426_v22 = vld [vmem:[%s1099_s24 + $0x50] sm:$0xff]  ;;  %vm451_vm1 = vcmask 261120   ;;  %p883_p12 = scmp.ne.s32.totalorder %s970_s26, 3 }
  0x34   : > { %v428_v18 = vld [vmem:[%s1099_s24 + $0x60] sm:$0xff]  ;;  %v429_v21 = vld [vmem:[%s1099_s24 + $0x68] sm:$0xff]  ;;  %v430_v23 = vld [vmem:[%s1099_s24 + $0x70] sm:$0xff] }
  0x35   : > { %v437_v20 = vpack.c.bf16 %v428_v18, %v424_v17  ;;  %v438_v24 = vpack.c.bf16 %v429_v21, %v425_v19  ;;  %v439_v25 = vpack.c.bf16 %v430_v23, %v426_v22  ;;  %v427_v26 = vld [vmem:[%s1099_s24 + $0x58] sm:$0xff]  ;;  %v416_v28 = vld [vmem:[%s1099_s24] sm:$0xff]  ;;  %v417_v31 = vld [vmem:[%s1099_s24 + $0x8] sm:$0xff] }
  0x36   : > { %v431_v27 = vld [vmem:[%s1099_s24 + $0x78] sm:$0xff]  ;;  %v420_v30 = vld [vmem:[%s1099_s24 + $0x20] sm:$0xff]  ;;  %v421_v32 = vld [vmem:[%s1099_s24 + $0x28] sm:$0xff] }
  0x37   : > { %461 = vmatpush.bf16.msra.mxu0 %v437_v20  ;;  %v440_v29 = vpack.c.bf16 %v431_v27, %v427_v26  ;;  %475 = vmatpush.bf16.msra.mxu1 %v438_v24  ;;  %v433_v33 = vpack.c.bf16 %v420_v30, %v416_v28  ;;  %v434_v34 = vpack.c.bf16 %v421_v32, %v417_v31  ;;  %v418_v35 = vld [vmem:[%s1099_s24 + $0x10] sm:$0xff]  ;;  %v419_v37 = vld [vmem:[%s1099_s24 + $0x18] sm:$0xff]  ;;  %v535_v44 = vld [vmem:[%s1097_s11 + $0x70] sm:$0xff] }
  0x38   : > { %489 = vmatpush.bf16.msra.mxu2 %v439_v25  ;;  %v422_v36 = vld [vmem:[%s1099_s24 + $0x30] sm:$0xff]  ;;  %v423_v39 = vld [vmem:[%s1099_s24 + $0x38] sm:$0xff]  ;;  %v536_v45 = vld [vmem:[%s1097_s11 + $0x78] sm:$0xff] }
  0x39   : > { %503 = vmatpush.bf16.msra.mxu3 %v440_v29  ;;  %v435_v38 = vpack.c.bf16 %v422_v36, %v418_v35  ;;  %v414_v40 = vld [vmem:[%s1242_s0] sm:$0xff]  ;;  %v415_v41 = vld [vmem:[%s1242_s0 + $0x8] sm:$0xff]  ;;  %v436_v42 = vpack.c.bf16 %v423_v39, %v419_v37  ;;  %v551_v46 = vld [vmem:[%s1097_s11 + $0xf0] sm:$0xff]  ;;  %v596_v47 = vpack.c.bf16 %v536_v45, %v535_v44 }
  0x3a   : > { %v432_v43 = vpack.c.bf16 %v415_v41, %v414_v40  ;;  %v552_v48 = vld [vmem:[%s1097_s11 + $0xf8] sm:$0xff]  ;;  %v533_v49 = vld [vmem:[%s1097_s11 + $0x60] sm:$0xff]  ;;  %v534_v50 = vld [vmem:[%s1097_s11 + $0x68] sm:$0xff] }
  0x3b   : > { %462 = vmatpush.bf16.msra.mxu0 %v433_v33  ;;  %476 = vmatpush.bf16.msra.mxu1 %v434_v34  ;;  %v604_v51 = vpack.c.bf16 %v552_v48, %v551_v46  ;;  %v549_v52 = vld [vmem:[%s1097_s11 + $0xe0] sm:$0xff]  ;;  %v550_v53 = vld [vmem:[%s1097_s11 + $0xe8] sm:$0xff]  ;;  %v567_v54 = vld [vmem:[%s1097_s11 + $0x170] sm:$0xff]  ;;  %v595_v55 = vpack.c.bf16 %v534_v50, %v533_v49 }
  0x3c   : > { %490 = vmatpush.bf16.msra.mxu2 %v435_v38  ;;  %v568_v56 = vld [vmem:[%s1097_s11 + $0x178] sm:$0xff]  ;;  %v583_v57 = vld [vmem:[%s1097_s11 + $0x1f0] sm:$0xff]  ;;  %v603_v59 = vpack.c.bf16 %v550_v53, %v549_v52  ;;  %v565_v2 = vld [vmem:[%s1097_s11 + $0x160] sm:$0xff] }
  0x3d   : > { %504 = vmatpush.bf16.msra.mxu3 %v436_v42  ;;  %v584_v58 = vld [vmem:[%s1097_s11 + $0x1f8] sm:$0xff]  ;;  %v612_v60 = vpack.c.bf16 %v568_v56, %v567_v54  ;;  %v531_v62 = vld [vmem:[%s1097_s11 + $0x50] sm:$0xff]  ;;  %v566_v3 = vld [vmem:[%s1097_s11 + $0x168] sm:$0xff] }
  0x3e   : > { %879 = vmatmul.msk.bf16.vlgmr.msra.gmra.mxu0 %vm451_vm1, %v432_v43  ;;  %v620_v61 = vpack.c.bf16 %v584_v58, %v583_v57  ;;  %v532_v63 = vld [vmem:[%s1097_s11 + $0x58] sm:$0xff]  ;;  %v547_v0 = vld [vmem:[%s1097_s11 + $0xd0] sm:$0xff]  ;;  %880 = vmatmul.msk.bf16.vlgmr.msra.gmra.mxu1 %vm451_vm1, %v432_v43  ;;  %v611_v4 = vpack.c.bf16 %v566_v3, %v565_v2  ;;  %v581_v5 = vld [vmem:[%s1097_s11 + $0x1e0] sm:$0xff] }
  0x3f   : > { %621 = vmatpush.bf16.msrb.mxu0 %v596_v47  ;;  %635 = vmatpush.bf16.msrb.mxu1 %v604_v51  ;;  %v548_v1 = vld [vmem:[%s1097_s11 + $0xd8] sm:$0xff]  ;;  %v582_v6 = vld [vmem:[%s1097_s11 + $0x1e8] sm:$0xff]  ;;  %v594_v7 = vpack.c.bf16 %v532_v63, %v531_v62  ;;  %v529_v9 = vld [vmem:[%s1097_s11 + $0x40] sm:$0xff] }
  0x40   : > { %881 = vmatmul.msk.bf16.vlgmr.msra.gmra.mxu2 %vm451_vm1, %v432_v43  ;;  %882 = vmatmul.msk.bf16.vlgmr.msra.gmra.mxu3 %vm451_vm1, %v432_v43  ;;  %v619_v8 = vpack.c.bf16 %v582_v6, %v581_v5  ;;  %v530_v10 = vld [vmem:[%s1097_s11 + $0x48] sm:$0xff]  ;;  %v602_v11 = vpack.c.bf16 %v548_v1, %v547_v0  ;;  %v563_v12 = vld [vmem:[%s1097_s11 + $0x150] sm:$0xff]  ;;  %v564_v13 = vld [vmem:[%s1097_s11 + $0x158] sm:$0xff] }
  0x41   : > { %649 = vmatpush.bf16.msrb.mxu2 %v612_v60  ;;  %663 = vmatpush.bf16.msrb.mxu3 %v620_v61  ;;  %v579_v14 = vld [vmem:[%s1097_s11 + $0x1d0] sm:$0xff]  ;;  %v545_v15 = vld [vmem:[%s1097_s11 + $0xc0] sm:$0xff]  ;;  %v546_v16 = vld [vmem:[%s1097_s11 + $0xc8] sm:$0xff]  ;;  %v610_v18 = vpack.c.bf16 %v564_v13, %v563_v12  ;;  %v593_v19 = vpack.c.bf16 %v530_v10, %v529_v9 }
  0x42   : > { %v580_v17 = vld [vmem:[%s1097_s11 + $0x1d8] sm:$0xff]  ;;  %v601_v21 = vpack.c.bf16 %v546_v16, %v545_v15  ;;  %v527_v22 = vld [vmem:[%s1097_s11 + $0x30] sm:$0xff]  ;;  %v561_v28 = vld [vmem:[%s1097_s11 + $0x140] sm:$0xff] }
  0x43   : > { %622 = vmatpush.bf16.msrb.mxu0 %v595_v55  ;;  %636 = vmatpush.bf16.msrb.mxu1 %v603_v59  ;;  %v618_v20 = vpack.c.bf16 %v580_v17, %v579_v14  ;;  %v528_v23 = vld [vmem:[%s1097_s11 + $0x38] sm:$0xff]  ;;  %v543_v24 = vld [vmem:[%s1097_s11 + $0xb0] sm:$0xff]  ;;  %v562_v29 = vld [vmem:[%s1097_s11 + $0x148] sm:$0xff] }
  0x44   : > { %v592_v25 = vpack.c.bf16 %v528_v23, %v527_v22  ;;  %v544_v26 = vld [vmem:[%s1097_s11 + $0xb8] sm:$0xff]  ;;  %v577_v30 = vld [vmem:[%s1097_s11 + $0x1c0] sm:$0xff]  ;;  %v609_v31 = vpack.c.bf16 %v562_v29, %v561_v28  ;;  %v578_v32 = vld [vmem:[%s1097_s11 + $0x1c8] sm:$0xff] }
  0x45   : > { %650 = vmatpush.bf16.msrb.mxu2 %v611_v4  ;;  %664 = vmatpush.bf16.msrb.mxu3 %v619_v8  ;;  %v600_v27 = vpack.c.bf16 %v544_v26, %v543_v24  ;;  %v617_v33 = vpack.c.bf16 %v578_v32, %v577_v30  ;;  %v525_v34 = vld [vmem:[%s1097_s11 + $0x20] sm:$0xff]  ;;  %v526_v35 = vld [vmem:[%s1097_s11 + $0x28] sm:$0xff]  ;;  %v559_v40 = vld [vmem:[%s1097_s11 + $0x130] sm:$0xff] }
  0x46   : > { %v541_v36 = vld [vmem:[%s1097_s11 + $0xa0] sm:$0xff]  ;;  %v591_v37 = vpack.c.bf16 %v526_v35, %v525_v34  ;;  %v542_v38 = vld [vmem:[%s1097_s11 + $0xa8] sm:$0xff]  ;;  %v560_v41 = vld [vmem:[%s1097_s11 + $0x138] sm:$0xff] }
  0x47   : > { %623 = vmatpush.bf16.msrb.mxu0 %v594_v7  ;;  %637 = vmatpush.bf16.msrb.mxu1 %v602_v11  ;;  %v599_v39 = vpack.c.bf16 %v542_v38, %v541_v36  ;;  %v575_v42 = vld [vmem:[%s1097_s11 + $0x1b0] sm:$0xff]  ;;  %v608_v43 = vpack.c.bf16 %v560_v41, %v559_v40  ;;  %v576_v44 = vld [vmem:[%s1097_s11 + $0x1b8] sm:$0xff]  ;;  %v557_v52 = vld [vmem:[%s1097_s11 + $0x120] sm:$0xff] }
  0x48   : > { %v616_v45 = vpack.c.bf16 %v576_v44, %v575_v42  ;;  %v523_v46 = vld [vmem:[%s1097_s11 + $0x10] sm:$0xff]  ;;  %v524_v47 = vld [vmem:[%s1097_s11 + $0x18] sm:$0xff]  ;;  %v558_v53 = vld [vmem:[%s1097_s11 + $0x128] sm:$0xff] }
  0x49   : > { %651 = vmatpush.bf16.msrb.mxu2 %v610_v18  ;;  %665 = vmatpush.bf16.msrb.mxu3 %v618_v20  ;;  %v539_v48 = vld [vmem:[%s1097_s11 + $0x90] sm:$0xff]  ;;  %v590_v49 = vpack.c.bf16 %v524_v47, %v523_v46  ;;  %v540_v50 = vld [vmem:[%s1097_s11 + $0x98] sm:$0xff]  ;;  %v573_v54 = vld [vmem:[%s1097_s11 + $0x1a0] sm:$0xff]  ;;  %v607_v55 = vpack.c.bf16 %v558_v53, %v557_v52 }
  0x4a   : > { %v598_v51 = vpack.c.bf16 %v540_v50, %v539_v48  ;;  %v574_v56 = vld [vmem:[%s1097_s11 + $0x1a8] sm:$0xff]  ;;  %v521_v58 = vld [vmem:[%s1097_s11] sm:$0xff]  ;;  %v555_v0 = vld [vmem:[%s1097_s11 + $0x110] sm:$0xff] }
  0x4b   : > { %624 = vmatpush.bf16.msrb.mxu0 %v593_v19  ;;  %638 = vmatpush.bf16.msrb.mxu1 %v601_v21  ;;  %v615_v57 = vpack.c.bf16 %v574_v56, %v573_v54  ;;  %v522_v59 = vld [vmem:[%s1097_s11 + $0x8] sm:$0xff]  ;;  %v537_v60 = vld [vmem:[%s1097_s11 + $0x80] sm:$0xff]  ;;  %v556_v1 = vld [vmem:[%s1097_s11 + $0x118] sm:$0xff] }
  0x4c   : > { %v589_v61 = vpack.c.bf16 %v522_v59, %v521_v58  ;;  %v538_v62 = vld [vmem:[%s1097_s11 + $0x88] sm:$0xff]  ;;  %v571_v2 = vld [vmem:[%s1097_s11 + $0x190] sm:$0xff]  ;;  %v606_v3 = vpack.c.bf16 %v556_v1, %v555_v0  ;;  %v572_v4 = vld [vmem:[%s1097_s11 + $0x198] sm:$0xff] }
  0x4d   : > { %652 = vmatpush.bf16.msrb.mxu2 %v609_v31  ;;  %666 = vmatpush.bf16.msrb.mxu3 %v617_v33  ;;  %v597_v63 = vpack.c.bf16 %v538_v62, %v537_v60  ;;  %v614_v5 = vpack.c.bf16 %v572_v4, %v571_v2  ;;  %v553_v6 = vld [vmem:[%s1097_s11 + $0x100] sm:$0xff]  ;;  %v554_v7 = vld [vmem:[%s1097_s11 + $0x108] sm:$0xff] }
  0x4e   : > { %v569_v8 = vld [vmem:[%s1097_s11 + $0x180] sm:$0xff]  ;;  %v605_v9 = vpack.c.bf16 %v554_v7, %v553_v6  ;;  %v570_v10 = vld [vmem:[%s1097_s11 + $0x188] sm:$0xff] }
  0x4f   : > { %625 = vmatpush.bf16.msrb.mxu0 %v592_v25  ;;  %639 = vmatpush.bf16.msrb.mxu1 %v600_v27  ;;  %v613_v11 = vpack.c.bf16 %v570_v10, %v569_v8  ;;  %v441_v12 = vld [vmem:[%s392_s23] sm:$0xf]  ;;  %v520_v59 = vld [vmem:[#allocation2 + $0x8] sm:$0xff] }
  0x50   : > { %v443_v14 = vperm.slane %v441_v12, 0  ;;  %v444_v16 = vperm.slane %v441_v12, 1  ;;  %v445_v26 = vperm.slane %v441_v12, 2  ;;  %v446_v28 = vperm.slane %v441_v12, 3 }
  0x51   : > { %653 = vmatpush.bf16.msrb.mxu2 %v608_v43  ;;  %667 = vmatpush.bf16.msrb.mxu3 %v616_v45 }
  0x53   : > { %626 = vmatpush.bf16.msrb.mxu0 %v591_v37  ;;  %640 = vmatpush.bf16.msrb.mxu1 %v599_v39 }
  0x55   : > { %654 = vmatpush.bf16.msrb.mxu2 %v607_v55  ;;  %668 = vmatpush.bf16.msrb.mxu3 %v615_v57 }
  0x57   : > { %627 = vmatpush.bf16.msrb.mxu0 %v590_v49  ;;  %641 = vmatpush.bf16.msrb.mxu1 %v598_v51  ;;  %v519_v51 = vld [vmem:[#allocation2] sm:$0xff] }
  0x59   : > { %655 = vmatpush.bf16.msrb.mxu2 %v606_v3  ;;  %669 = vmatpush.bf16.msrb.mxu3 %v614_v5 }
  0x5b   : > { %628 = vmatpush.bf16.msrb.mxu0 %v589_v61  ;;  %642 = vmatpush.bf16.msrb.mxu1 %v597_v63 }
  0x5d   : > { %656 = vmatpush.bf16.msrb.mxu2 %v605_v9  ;;  %670 = vmatpush.bf16.msrb.mxu3 %v613_v11 }
  0xbb   : > { %v464_v13 = vpop.f32.mrf.mxu0  ;;  %v478_v15 = vpop.f32.mrf.mxu1 }
  0xbc   : > { %v465_v17 = vadd.f32 %v464_v13, %v443_v14  ;;  %v479_v18 = vadd.f32 %v478_v15, %v444_v16 }
  0xbe   : > { %v511_v22 = vmax.f32 %v465_v17, 0.0  ;;  %v512_v25 = vmax.f32 %v479_v18, 0.0 }
  0xc3   : > { %v492_v19 = vpop.f32.mrf.mxu2  ;;  %v506_v20 = vpop.f32.mrf.mxu3 }
  0xc4   : > { %v466_v21 = vpop.f32.mrf.mxu0  ;;  %v480_v24 = vpop.f32.mrf.mxu1  ;;  %v493_v32 = vadd.f32 %v492_v19, %v445_v26  ;;  %v507_v34 = vadd.f32 %v506_v20, %v446_v28 }
  0xc5   : > { %v467_v23 = vadd.f32 %v466_v21, %v443_v14  ;;  %v481_v27 = vadd.f32 %v480_v24, %v444_v16 }
  0xc6   : > { %v513_v39 = vmax.f32 %v493_v32, 0.0  ;;  %v514_v41 = vmax.f32 %v507_v34, 0.0 }
  0xc7   : > { %v515_v29 = vmax.f32 %v467_v23, 0.0  ;;  %v516_v30 = vmax.f32 %v481_v27, 0.0 }
  0xc9   : > { %v585_v31 = vpack.c.bf16 %v515_v29, %v511_v22  ;;  %v586_v33 = vpack.c.bf16 %v516_v30, %v512_v25 }
  0xcb   : > { %v494_v35 = vpop.f32.mrf.mxu2  ;;  %629 = vmatmul.bf16.vlgmr.msrb.gmra.mxu0 %v585_v31  ;;  %v508_v37 = vpop.f32.mrf.mxu3  ;;  %643 = vmatmul.bf16.vlgmr.msrb.gmra.mxu1 %v586_v33 }
  0xcc   : > { %v495_v36 = vadd.f32 %v494_v35, %v445_v26  ;;  %v509_v38 = vadd.f32 %v508_v37, %v446_v28 }
  0xce   : > { %v517_v40 = vmax.f32 %v495_v36, 0.0  ;;  %v518_v42 = vmax.f32 %v509_v38, 0.0 }
  0xd0   : > { %v587_v43 = vpack.c.bf16 %v517_v40, %v513_v39  ;;  %v588_v44 = vpack.c.bf16 %v518_v42, %v514_v41 }
  0xd2   : > { %657 = vmatmul.bf16.vlgmr.msrb.gmra.mxu2 %v587_v43  ;;  %671 = vmatmul.bf16.vlgmr.msrb.gmra.mxu3 %v588_v44 }
 0x148   : > { %v630_v45 = vpop.f32.mrf.mxu0  ;;  %v644_v46 = vpop.f32.mrf.mxu1 }
 0x149   : > { %v645_v47 = vadd.f32 %v644_v46, %v630_v45 }
 0x150   : > { %v632_v53 = vpop.f32.mrf.mxu0  ;;  %v646_v54 = vpop.f32.mrf.mxu1 }
 0x151   : > { %v647_v56 = vadd.f32 %v646_v54, %v632_v53 }
 0x155   : > { %v658_v48 = vpop.f32.mrf.mxu2  ;;  %v672_v50 = vpop.f32.mrf.mxu3 }
 0x156   : > { %v659_v49 = vadd.f32 %v658_v48, %v645_v47 }
 0x158   : > { %v673_v52 = vadd.f32 %v672_v50, %v659_v49 }
 0x15a   : > { %v677_v55 = vadd.f32 %v673_v52, %v519_v51 }
 0x15c   : > { %679 = vst.msk [vmem:[#allocation2] sm:$0xff] %vm451_vm1, %v677_v55 }
 0x15d   : > { %v660_v57 = vpop.f32.mrf.mxu2  ;;  %v674_v60 = vpop.f32.mrf.mxu3 }
 0x15e   : > { %v661_v58 = vadd.f32 %v660_v57, %v647_v56 }
 0x160   : > { %v675_v61 = vadd.f32 %v674_v60, %v661_v58  ;;  %684 = sbr.rel (%p883_p12) target bundleno = 640 (0x280), region = 79 }
 0x162   : > { %v678_v62 = vadd.f32 %v675_v61, %v520_v59 }
 0x164   : > { %680 = vst.msk [vmem:[#allocation2 + $0x8] sm:$0xff] %vm451_vm1, %v678_v62 }
 0x165   : > { %v685_v63 = vld [vmem:[#allocation2] sm:$0xff]  ;;  %v694_v6 = vld [vmem:[%s1242_s0 + $0x8] sm:$0xff]  ;;  %v981_v10 = vmov 32.0  }
 0x166   : > { %v931_v0 = vld [vmem:[%s1246_s4] ss:$0 sm:$0xff]  ;;  %934 = vrcp.f32 %v981_v10 }
 0x167   : > { %v693_v1 = vld [vmem:[%s1242_s0] sm:$0xff]  ;;  %v691_v3 = vadd.f32 %v931_v0, %v685_v63 }
 0x168   : > { %v932_v41 = vld [vmem:[%s1247_s5] ss:$0 sm:$0xff] }
 0x169   : > { %v695_v4 = vadd.f32 %v693_v1, %v691_v3  ;;  %v933_v44 = vld [vmem:[%s1248_s6] ss:$0 sm:$0xff] }
 0x16b   : > { %v686_v2 = vld [vmem:[#allocation2 + $0x8] sm:$0xff]  ;;  %v697_v7 = vsel %vm451_vm1, %v695_v4, 0.0 }
 0x16c   : > { %v692_v5 = vadd.f32 %v931_v0, %v686_v2  ;;  %698 = vadd.xlane.f32.xlu0 %v697_v7  ;;  %v935_v11 = vpop.eup %934 }
 0x16d   : > { %v704_v12 = vmul.f32 32.0, %v935_v11  ;;  %vm708_vm2 = vweird.f32 %v935_v11 }
 0x16e   : > { %v696_v8 = vadd.f32 %v694_v6, %v692_v5 }
 0x16f   : > { %v705_v13 = vsub.f32 1.0, %v704_v12 }
 0x170   : > { %v700_v9 = vsel %vm451_vm1, %v696_v8, 0.0 }
 0x171   : > { %v706_v14 = vmul.f32 %v935_v11, %v705_v13 }
 0x173   : > { %v707_v15 = vadd.f32 %v935_v11, %v706_v14 }
 0x174   : > { %701 = vadd.xlane.f32.xlu0 %v700_v9 }
 0x175   : > { %v709_v16 = vsel %vm708_vm2, %v935_v11, %v707_v15 }
 0x1df   : > { %v699_v17 = vpop.xlane.xlu0 %698 }
 0x1e0   : > { %v710_v18 = vmul.f32 %v709_v16, %v699_v17 }
 0x1e2   : > { %v712_v19 = vsub.f32 %v695_v4, %v710_v18 }
 0x1e4   : > { %v714_v20 = vmul.f32 %v712_v19, %v712_v19 }
 0x1e6   : > { %v716_v21 = vsel %vm451_vm1, %v714_v20, 0.0 }
 0x1e7   : > { %717 = vadd.xlane.f32.xlu1 %v716_v21  ;;  %v702_v22 = vpop.xlane.xlu0 %701 }
 0x1e8   : > { %v711_v23 = vmul.f32 %v709_v16, %v702_v22 }
 0x1ea   : > { %v713_v24 = vsub.f32 %v696_v8, %v711_v23 }
 0x1ec   : > { %v715_v25 = vmul.f32 %v713_v24, %v713_v24 }
 0x1ee   : > { %v719_v26 = vsel %vm451_vm1, %v715_v25, 0.0 }
 0x1ef   : > { %720 = vadd.xlane.f32.xlu1 %v719_v26 }
 0x25a   : > { %v718_v27 = vpop.xlane.xlu1 %717 }
 0x25b   : > { %v722_v28 = vmul.f32 %v718_v27, %v709_v16 }
 0x25d   : > { %v724_v29 = vadd.f32 1e-05, %v722_v28 }
 0x25f   : > { %936 = vrsqrt.f32 %v724_v29  ;;  %vm732_vm4 = vweird.f32 %v724_v29 }
 0x262   : > { %v721_v30 = vpop.xlane.xlu1 %720 }
 0x263   : > { %v723_v31 = vmul.f32 %v721_v30, %v709_v16 }
 0x265   : > { %v937_v32 = vpop.eup %936  ;;  %v725_v33 = vadd.f32 1e-05, %v723_v31 }
 0x266   : > { %v727_v34 = vmul.f32 %v937_v32, %v724_v29  ;;  %vm733_vm3 = vweird.f32 %v937_v32 }
 0x267   : > { %938 = vrsqrt.f32 %v725_v33  ;;  %vm734_vm5 = vmor %vm732_vm4, %vm733_vm3  ;;  %vm742_vm7 = vweird.f32 %v725_v33 }
 0x268   : > { %v728_v35 = vmul.f32 %v937_v32, %v727_v34 }
 0x26a   : > { %v729_v36 = vmul.f32 0.5, %v728_v35 }
 0x26c   : > { %v730_v37 = vsub.f32 1.5, %v729_v36 }
 0x26d   : > { %v939_v38 = vpop.eup %938 }
 0x26e   : > { %v731_v39 = vmul.f32 %v937_v32, %v730_v37  ;;  %v737_v40 = vmul.f32 %v939_v38, %v725_v33  ;;  %vm743_vm6 = vweird.f32 %v939_v38 }
 0x26f   : > { %vm744_vm8 = vmor %vm742_vm7, %vm743_vm6 }
 0x270   : > { %v735_v42 = vsel %vm734_vm5, %v937_v32, %v731_v39  ;;  %v738_v43 = vmul.f32 %v939_v38, %v737_v40 }
 0x271   : > { %v746_v45 = vmul.f32 %v735_v42, %v712_v19 }
 0x272   : > { %v739_v46 = vmul.f32 0.5, %v738_v43 }
 0x273   : > { %v752_v47 = vmul.f32 %v932_v41, %v746_v45 }
 0x274   : > { %v740_v48 = vsub.f32 1.5, %v739_v46 }
 0x275   : > { %v758_v49 = vadd.f32 %v933_v44, %v752_v47 }
 0x276   : > { %v741_v50 = vmul.f32 %v939_v38, %v740_v48 }
 0x277   : > { %760 = vst.msk [vmem:[%s1249_s7] sm:$0xff] %vm451_vm1, %v758_v49 }
 0x278   : > { %v745_v51 = vsel %vm744_vm8, %v939_v38, %v741_v50 }
 0x279   : > { %v747_v52 = vmul.f32 %v745_v51, %v713_v24 }
 0x27b   : > { %v753_v53 = vmul.f32 %v932_v41, %v747_v52 }
 0x27d   : > { %v759_v54 = vadd.f32 %v933_v44, %v753_v53 }
 0x27f   : > { %761 = vst.msk [vmem:[%s1249_s7 + $0x8] sm:$0xff] %vm451_vm1, %v759_v54 }
 0x280 PF: > { %s17_s28 = sadd.s32 1, %s978_s28   ;;  %s1250_s24 = smov %s966_s25 }
 0x281   : > { %p14_p13 = scmp.ge.s32.totalorder %s17_s28, 6   ;;  %s1251_s25 = smov %s1057_s9 }
 0x282   : > { %s1252_s26 = smov %s974_s27  ;;  %s1253_s27 = smov %s1255_s29 }
 0x283   :  { %16 = sbr.rel (!%p14_p13) target bundleno = 3 (0x3), region = 123 }

// kernel: encoder_forward.15
= control target key start
LH: loop header
LB: loop body
LE: loop exit
PB: predicated region body
PF: predicated region fallthrough
CT: control target
= control target key end

     0   :  { %12 = vsyncpa [#allocation5], 0  ;;  %s1059_s24 = smov 0   ;;  %s1061_s25 = smov 0   ;;  %s1279_s0 = inlined_call_operand.vmem [shape: f32[16,32], index: 0, kind: input, shape index: {}]   ;;  %s1280_s1 = inlined_call_operand.vmem [shape: f32[32,2048], index: 1, kind: input, shape index: {}]   ;;  %s1281_s2 = inlined_call_operand.vmem [shape: f32[1,2048], index: 2, kind: input, shape index: {}]   ;;  %s1282_s3 = inlined_call_operand.vmem [shape: f32[2048,32], index: 3, kind: input, shape index: {}]   ;;  %s1283_s4 = inlined_call_operand.vmem [shape: f32[1,32], index: 4, kind: input, shape index: {}]   ;;  %s1284_s5 = inlined_call_operand.vmem [shape: f32[1,32], index: 5, kind: input, shape index: {}]   ;;  %s1285_s6 = inlined_call_operand.vmem [shape: f32[1,32], index: 6, kind: input, shape index: {}]   ;;  %s1286_s7 = inlined_call_operand.hbm [shape: f32[16,32], index: 7, kind: output, shape index: {}]  }
   0x1   :  { %s1063_s26 = smov 0   ;;  %s1065_s27 = smov 0  }
   0x2   :  { %s1067_s28 = smov 0  }
   0x3 LB: > { %s859_s29 = sadd.s32 4294967295, %s1012_s28   ;;  %s27_s30 = sadd.s32 1, %s1008_s27  ;;  %s1012_s28 = sphi %s1067_s28, %s18_s28   ;;  %s1008_s27 = sphi %s1065_s27, %s1290_s27   ;;  %s1004_s26 = sphi %s1063_s26, %s1289_s26   ;;  %s1000_s25 = sphi %s1061_s25, %s1288_s25   ;;  %s996_s24 = sphi %s1059_s24, %s1287_s24  }
   0x4   : > { %p28_p0 = scmp.ge.s32.totalorder %s27_s30, 4  ;;  %p70_p1 = scmp.ne.s32.totalorder %s1000_s25, %s996_s24 }
   0x5   : > { %p71_p2 = scmp.eq.s32.totalorder %s1012_s28, 0  ;;  %s63_s9 = sadd.s32 1, %s1000_s25 }
   0x6   : > { %s1292_s30 = smov (%p28_p0, %s27_s30), 0  ;;  %p862_p5 = scmp.ge.s32.totalorder %s1012_s28, 4 }
   0x7   : > { %p72_p3 = por %p71_p2, %p70_p1  ;;  %s60_s8 = ssub.s32 %s1008_s27, %s1292_s30 }
   0x8   : > { %p61_p4 = scmp.eq.s32.totalorder %s60_s8, 0  ;;  %255 = sbr.rel (%p862_p5) target bundleno = 33 (0x21), region = 32 }
   0xa   : > { %s1095_s10 = scalar_select %p61_p4, %s1000_s25, %s63_s9  }
   0xd   : > { %258 = sbr.rel (!%p72_p3) target bundleno = 33 (0x21), region = 36  ;;  %s260_s11 = sand.u32 (%p72_p3), 1, %s1000_s25  }
   0xe   : > { %s881_s12 = sshll.u32 (%p72_p3), %s1008_s27, 5  ;;  %s863_s13 = sshll.u32 (%p72_p3), %s260_s11, 7 }
   0xf   : > { %s1103_s16 = scalar_lea.vmem (%p72_p3), %s1280_s1, %s881_s12  ;;  %s262_s17 = scalar_lea.vmem (%p72_p3), [#allocation3], %s863_s13 }
  0x10   : > { %v278_v0 = vld [vmem:[%s1103_s16] sm:$0xff] (%p72_p3)  ;;  %v280_v1 = vld [vmem:[%s1103_s16 + $0x8] sm:$0xff] (%p72_p3)  ;;  %v282_v2 = vld [vmem:[%s1103_s16 + $0x10] sm:$0xff] (%p72_p3) }
  0x11   : > { %279 = vst [vmem:[%s262_s17] sm:$0xff] (%p72_p3), %v278_v0  ;;  %v284_v3 = vld [vmem:[%s1103_s16 + $0x18] sm:$0xff] (%p72_p3)  ;;  %v286_v4 = vld [vmem:[%s1103_s16 + $0x80] sm:$0xff] (%p72_p3)  ;;  %v288_v5 = vld [vmem:[%s1103_s16 + $0x88] sm:$0xff] (%p72_p3) }
  0x12   : > { %281 = vst [vmem:[%s262_s17 + $0x8] sm:$0xff] %v280_v1  ;;  %v290_v6 = vld [vmem:[%s1103_s16 + $0x90] sm:$0xff]  ;;  %v292_v7 = vld [vmem:[%s1103_s16 + $0x98] sm:$0xff]  ;;  %v294_v8 = vld [vmem:[%s1103_s16 + $0x100] sm:$0xff] }
  0x13   : > { %283 = vst [vmem:[%s262_s17 + $0x10] sm:$0xff] %v282_v2  ;;  %v296_v9 = vld [vmem:[%s1103_s16 + $0x108] sm:$0xff]  ;;  %v298_v10 = vld [vmem:[%s1103_s16 + $0x110] sm:$0xff]  ;;  %v300_v11 = vld [vmem:[%s1103_s16 + $0x118] sm:$0xff] }
  0x14   : > { %285 = vst [vmem:[%s262_s17 + $0x18] sm:$0xff] %v284_v3  ;;  %v302_v12 = vld [vmem:[%s1103_s16 + $0x180] sm:$0xff]  ;;  %v304_v13 = vld [vmem:[%s1103_s16 + $0x188] sm:$0xff]  ;;  %v306_v14 = vld [vmem:[%s1103_s16 + $0x190] sm:$0xff] }
  0x15   : > { %287 = vst [vmem:[%s262_s17 + $0x20] sm:$0xff] %v286_v4  ;;  %v308_v15 = vld [vmem:[%s1103_s16 + $0x198] sm:$0xff] }
  0x16   : > { %289 = vst [vmem:[%s262_s17 + $0x28] sm:$0xff] %v288_v5 }
  0x17   : > { %291 = vst [vmem:[%s262_s17 + $0x30] sm:$0xff] %v290_v6 }
  0x18   : > { %293 = vst [vmem:[%s262_s17 + $0x38] sm:$0xff] %v292_v7 }
  0x19   : > { %295 = vst [vmem:[%s262_s17 + $0x40] sm:$0xff] %v294_v8 }
  0x1a   : > { %297 = vst [vmem:[%s262_s17 + $0x48] sm:$0xff] %v296_v9 }
  0x1b   : > { %299 = vst [vmem:[%s262_s17 + $0x50] sm:$0xff] %v298_v10 }
  0x1c   : > { %301 = vst [vmem:[%s262_s17 + $0x58] sm:$0xff] %v300_v11 }
  0x1d   : > { %303 = vst [vmem:[%s262_s17 + $0x60] sm:$0xff] %v302_v12 }
  0x1e   : > { %305 = vst [vmem:[%s262_s17 + $0x68] sm:$0xff] %v304_v13 }
  0x1f   : > { %307 = vst [vmem:[%s262_s17 + $0x70] sm:$0xff] %v306_v14 }
  0x20   : > { %309 = vst [vmem:[%s262_s17 + $0x78] sm:$0xff] %v308_v15 }
  0x21 PF: > { %p866_p6 = scmp.ge.s32.totalorder %s1012_s28, 1  ;;  %p331_p7 = scmp.lt.s32.totalorder %s1012_s28, 5 }
  0x23   : > { %p332_p8 = pnand %p866_p6, %p331_p7 }
  0x24   : > { %s338_s18 = sand.u32 (!%p332_p8), 1, %s996_s24   ;;  %s868_s19 = sshll.u32 (!%p332_p8), %s1004_s26, 2 }
  0x25   : > { %335 = sbr.rel (%p332_p8) target bundleno = 647 (0x287), region = 67  ;;  %s867_s20 = sshll.u32 (!%p332_p8), %s338_s18, 7 }
  0x26   : > { %p386_p9 = scmp.lt.s32.totalorder (!%p332_p8), %s868_s19, 15  ;;  %s869_s21 = sshll.u32 (!%p332_p8), %s1004_s26, 6 }
  0x27   : > { %p391_p10 = scmp.lt.s32.totalorder (!%p332_p8), %s869_s21, 255  ;;  %s1137_s24 = scalar_lea.vmem (!%p332_p8), [#allocation3], %s867_s20 }
  0x28   : > { %p871_p11 = scmp.ne.s32.totalorder (!%p332_p8), %s1004_s26, 0 }
  0x2a   : > { %s1294_s19 = smov (!%p386_p9, %s868_s19), 15  ;;  %s1296_s21 = smov (!%p391_p10, %s869_s21), 255 }
  0x2b   : > { %s388_s8 = scalar_lea.vmem %s1281_s2, %s1294_s19  ;;  %s870_s9 = sshll.u32 %s1296_s21, 3 }
  0x2c   : > { %s1135_s13 = scalar_lea.vmem %s1282_s3, %s870_s9  ;;  %401 = sbr.rel (%p871_p11) target bundleno = 52 (0x34), region = 75 }
  0x31   : > { %vm402_vm0 = vcmask 261120   ;;  %v1014_v16 = vmov 0.0  }
  0x32   : > { %403 = vst.msk [vmem:[#allocation2] sm:$0xff] %vm402_vm0, %v1014_v16 }
  0x33   : > { %404 = vst.msk [vmem:[#allocation2 + $0x8] sm:$0xff] %vm402_vm0, %v1014_v16 }
  0x34 PF: > { %v415_v17 = vld [vmem:[%s1137_s24 + $0x40] sm:$0xff]  ;;  %v416_v19 = vld [vmem:[%s1137_s24 + $0x48] sm:$0xff]  ;;  %v417_v22 = vld [vmem:[%s1137_s24 + $0x50] sm:$0xff]  ;;  %vm442_vm1 = vcmask 261120   ;;  %p876_p12 = scmp.ne.s32.totalorder %s1004_s26, 3 }
  0x35   : > { %v419_v18 = vld [vmem:[%s1137_s24 + $0x60] sm:$0xff]  ;;  %v420_v21 = vld [vmem:[%s1137_s24 + $0x68] sm:$0xff]  ;;  %v421_v23 = vld [vmem:[%s1137_s24 + $0x70] sm:$0xff] }
  0x36   : > { %v428_v20 = vpack.c.bf16 %v419_v18, %v415_v17  ;;  %v429_v24 = vpack.c.bf16 %v420_v21, %v416_v19  ;;  %v430_v25 = vpack.c.bf16 %v421_v23, %v417_v22  ;;  %v418_v26 = vld [vmem:[%s1137_s24 + $0x58] sm:$0xff]  ;;  %v407_v28 = vld [vmem:[%s1137_s24] sm:$0xff]  ;;  %v408_v31 = vld [vmem:[%s1137_s24 + $0x8] sm:$0xff] }
  0x37   : > { %v422_v27 = vld [vmem:[%s1137_s24 + $0x78] sm:$0xff]  ;;  %v411_v30 = vld [vmem:[%s1137_s24 + $0x20] sm:$0xff]  ;;  %v412_v32 = vld [vmem:[%s1137_s24 + $0x28] sm:$0xff] }
  0x38   : > { %452 = vmatpush.bf16.msra.mxu0 %v428_v20  ;;  %v431_v29 = vpack.c.bf16 %v422_v27, %v418_v26  ;;  %466 = vmatpush.bf16.msra.mxu1 %v429_v24  ;;  %v424_v33 = vpack.c.bf16 %v411_v30, %v407_v28  ;;  %v425_v34 = vpack.c.bf16 %v412_v32, %v408_v31  ;;  %v409_v35 = vld [vmem:[%s1137_s24 + $0x10] sm:$0xff]  ;;  %v410_v37 = vld [vmem:[%s1137_s24 + $0x18] sm:$0xff]  ;;  %v526_v44 = vld [vmem:[%s1135_s13 + $0x70] sm:$0xff] }
  0x39   : > { %480 = vmatpush.bf16.msra.mxu2 %v430_v25  ;;  %v413_v36 = vld [vmem:[%s1137_s24 + $0x30] sm:$0xff]  ;;  %v414_v39 = vld [vmem:[%s1137_s24 + $0x38] sm:$0xff]  ;;  %v527_v45 = vld [vmem:[%s1135_s13 + $0x78] sm:$0xff] }
  0x3a   : > { %494 = vmatpush.bf16.msra.mxu3 %v431_v29  ;;  %v426_v38 = vpack.c.bf16 %v413_v36, %v409_v35  ;;  %v405_v40 = vld [vmem:[%s1279_s0] sm:$0xff]  ;;  %v406_v41 = vld [vmem:[%s1279_s0 + $0x8] sm:$0xff]  ;;  %v427_v42 = vpack.c.bf16 %v414_v39, %v410_v37  ;;  %v542_v46 = vld [vmem:[%s1135_s13 + $0xf0] sm:$0xff]  ;;  %v587_v47 = vpack.c.bf16 %v527_v45, %v526_v44 }
  0x3b   : > { %v423_v43 = vpack.c.bf16 %v406_v41, %v405_v40  ;;  %v543_v48 = vld [vmem:[%s1135_s13 + $0xf8] sm:$0xff]  ;;  %v524_v49 = vld [vmem:[%s1135_s13 + $0x60] sm:$0xff]  ;;  %v525_v50 = vld [vmem:[%s1135_s13 + $0x68] sm:$0xff] }
  0x3c   : > { %453 = vmatpush.bf16.msra.mxu0 %v424_v33  ;;  %467 = vmatpush.bf16.msra.mxu1 %v425_v34  ;;  %v595_v51 = vpack.c.bf16 %v543_v48, %v542_v46  ;;  %v540_v52 = vld [vmem:[%s1135_s13 + $0xe0] sm:$0xff]  ;;  %v541_v53 = vld [vmem:[%s1135_s13 + $0xe8] sm:$0xff]  ;;  %v558_v54 = vld [vmem:[%s1135_s13 + $0x170] sm:$0xff]  ;;  %v586_v55 = vpack.c.bf16 %v525_v50, %v524_v49 }
  0x3d   : > { %481 = vmatpush.bf16.msra.mxu2 %v426_v38  ;;  %v559_v56 = vld [vmem:[%s1135_s13 + $0x178] sm:$0xff]  ;;  %v574_v57 = vld [vmem:[%s1135_s13 + $0x1f0] sm:$0xff]  ;;  %v594_v59 = vpack.c.bf16 %v541_v53, %v540_v52  ;;  %v556_v2 = vld [vmem:[%s1135_s13 + $0x160] sm:$0xff] }
  0x3e   : > { %495 = vmatpush.bf16.msra.mxu3 %v427_v42  ;;  %v575_v58 = vld [vmem:[%s1135_s13 + $0x1f8] sm:$0xff]  ;;  %v603_v60 = vpack.c.bf16 %v559_v56, %v558_v54  ;;  %v522_v62 = vld [vmem:[%s1135_s13 + $0x50] sm:$0xff]  ;;  %v557_v3 = vld [vmem:[%s1135_s13 + $0x168] sm:$0xff] }
  0x3f   : > { %872 = vmatmul.msk.bf16.vlgmr.msra.gmra.mxu0 %vm442_vm1, %v423_v43  ;;  %v611_v61 = vpack.c.bf16 %v575_v58, %v574_v57  ;;  %v523_v63 = vld [vmem:[%s1135_s13 + $0x58] sm:$0xff]  ;;  %v538_v0 = vld [vmem:[%s1135_s13 + $0xd0] sm:$0xff]  ;;  %873 = vmatmul.msk.bf16.vlgmr.msra.gmra.mxu1 %vm442_vm1, %v423_v43  ;;  %v602_v4 = vpack.c.bf16 %v557_v3, %v556_v2  ;;  %v572_v5 = vld [vmem:[%s1135_s13 + $0x1e0] sm:$0xff] }
  0x40   : > { %612 = vmatpush.bf16.msrb.mxu0 %v587_v47  ;;  %626 = vmatpush.bf16.msrb.mxu1 %v595_v51  ;;  %v539_v1 = vld [vmem:[%s1135_s13 + $0xd8] sm:$0xff]  ;;  %v573_v6 = vld [vmem:[%s1135_s13 + $0x1e8] sm:$0xff]  ;;  %v585_v7 = vpack.c.bf16 %v523_v63, %v522_v62  ;;  %v520_v9 = vld [vmem:[%s1135_s13 + $0x40] sm:$0xff] }
  0x41   : > { %874 = vmatmul.msk.bf16.vlgmr.msra.gmra.mxu2 %vm442_vm1, %v423_v43  ;;  %875 = vmatmul.msk.bf16.vlgmr.msra.gmra.mxu3 %vm442_vm1, %v423_v43  ;;  %v610_v8 = vpack.c.bf16 %v573_v6, %v572_v5  ;;  %v521_v10 = vld [vmem:[%s1135_s13 + $0x48] sm:$0xff]  ;;  %v593_v11 = vpack.c.bf16 %v539_v1, %v538_v0  ;;  %v554_v12 = vld [vmem:[%s1135_s13 + $0x150] sm:$0xff]  ;;  %v555_v13 = vld [vmem:[%s1135_s13 + $0x158] sm:$0xff] }
  0x42   : > { %640 = vmatpush.bf16.msrb.mxu2 %v603_v60  ;;  %654 = vmatpush.bf16.msrb.mxu3 %v611_v61  ;;  %v570_v14 = vld [vmem:[%s1135_s13 + $0x1d0] sm:$0xff]  ;;  %v536_v15 = vld [vmem:[%s1135_s13 + $0xc0] sm:$0xff]  ;;  %v537_v16 = vld [vmem:[%s1135_s13 + $0xc8] sm:$0xff]  ;;  %v601_v18 = vpack.c.bf16 %v555_v13, %v554_v12  ;;  %v584_v19 = vpack.c.bf16 %v521_v10, %v520_v9 }
  0x43   : > { %v571_v17 = vld [vmem:[%s1135_s13 + $0x1d8] sm:$0xff]  ;;  %v592_v21 = vpack.c.bf16 %v537_v16, %v536_v15  ;;  %v518_v22 = vld [vmem:[%s1135_s13 + $0x30] sm:$0xff]  ;;  %v552_v28 = vld [vmem:[%s1135_s13 + $0x140] sm:$0xff] }
  0x44   : > { %613 = vmatpush.bf16.msrb.mxu0 %v586_v55  ;;  %627 = vmatpush.bf16.msrb.mxu1 %v594_v59  ;;  %v609_v20 = vpack.c.bf16 %v571_v17, %v570_v14  ;;  %v519_v23 = vld [vmem:[%s1135_s13 + $0x38] sm:$0xff]  ;;  %v534_v24 = vld [vmem:[%s1135_s13 + $0xb0] sm:$0xff]  ;;  %v553_v29 = vld [vmem:[%s1135_s13 + $0x148] sm:$0xff] }
  0x45   : > { %v583_v25 = vpack.c.bf16 %v519_v23, %v518_v22  ;;  %v535_v26 = vld [vmem:[%s1135_s13 + $0xb8] sm:$0xff]  ;;  %v568_v30 = vld [vmem:[%s1135_s13 + $0x1c0] sm:$0xff]  ;;  %v600_v31 = vpack.c.bf16 %v553_v29, %v552_v28  ;;  %v569_v32 = vld [vmem:[%s1135_s13 + $0x1c8] sm:$0xff] }
  0x46   : > { %641 = vmatpush.bf16.msrb.mxu2 %v602_v4  ;;  %655 = vmatpush.bf16.msrb.mxu3 %v610_v8  ;;  %v591_v27 = vpack.c.bf16 %v535_v26, %v534_v24  ;;  %v608_v33 = vpack.c.bf16 %v569_v32, %v568_v30  ;;  %v516_v34 = vld [vmem:[%s1135_s13 + $0x20] sm:$0xff]  ;;  %v517_v35 = vld [vmem:[%s1135_s13 + $0x28] sm:$0xff]  ;;  %v550_v40 = vld [vmem:[%s1135_s13 + $0x130] sm:$0xff] }
  0x47   : > { %v532_v36 = vld [vmem:[%s1135_s13 + $0xa0] sm:$0xff]  ;;  %v582_v37 = vpack.c.bf16 %v517_v35, %v516_v34  ;;  %v533_v38 = vld [vmem:[%s1135_s13 + $0xa8] sm:$0xff]  ;;  %v551_v41 = vld [vmem:[%s1135_s13 + $0x138] sm:$0xff] }
  0x48   : > { %614 = vmatpush.bf16.msrb.mxu0 %v585_v7  ;;  %628 = vmatpush.bf16.msrb.mxu1 %v593_v11  ;;  %v590_v39 = vpack.c.bf16 %v533_v38, %v532_v36  ;;  %v566_v42 = vld [vmem:[%s1135_s13 + $0x1b0] sm:$0xff]  ;;  %v599_v43 = vpack.c.bf16 %v551_v41, %v550_v40  ;;  %v567_v44 = vld [vmem:[%s1135_s13 + $0x1b8] sm:$0xff]  ;;  %v548_v52 = vld [vmem:[%s1135_s13 + $0x120] sm:$0xff] }
  0x49   : > { %v607_v45 = vpack.c.bf16 %v567_v44, %v566_v42  ;;  %v514_v46 = vld [vmem:[%s1135_s13 + $0x10] sm:$0xff]  ;;  %v515_v47 = vld [vmem:[%s1135_s13 + $0x18] sm:$0xff]  ;;  %v549_v53 = vld [vmem:[%s1135_s13 + $0x128] sm:$0xff] }
  0x4a   : > { %642 = vmatpush.bf16.msrb.mxu2 %v601_v18  ;;  %656 = vmatpush.bf16.msrb.mxu3 %v609_v20  ;;  %v530_v48 = vld [vmem:[%s1135_s13 + $0x90] sm:$0xff]  ;;  %v581_v49 = vpack.c.bf16 %v515_v47, %v514_v46  ;;  %v531_v50 = vld [vmem:[%s1135_s13 + $0x98] sm:$0xff]  ;;  %v564_v54 = vld [vmem:[%s1135_s13 + $0x1a0] sm:$0xff]  ;;  %v598_v55 = vpack.c.bf16 %v549_v53, %v548_v52 }
  0x4b   : > { %v589_v51 = vpack.c.bf16 %v531_v50, %v530_v48  ;;  %v565_v56 = vld [vmem:[%s1135_s13 + $0x1a8] sm:$0xff]  ;;  %v512_v58 = vld [vmem:[%s1135_s13] sm:$0xff]  ;;  %v546_v0 = vld [vmem:[%s1135_s13 + $0x110] sm:$0xff] }
  0x4c   : > { %615 = vmatpush.bf16.msrb.mxu0 %v584_v19  ;;  %629 = vmatpush.bf16.msrb.mxu1 %v592_v21  ;;  %v606_v57 = vpack.c.bf16 %v565_v56, %v564_v54  ;;  %v513_v59 = vld [vmem:[%s1135_s13 + $0x8] sm:$0xff]  ;;  %v528_v60 = vld [vmem:[%s1135_s13 + $0x80] sm:$0xff]  ;;  %v547_v1 = vld [vmem:[%s1135_s13 + $0x118] sm:$0xff] }
  0x4d   : > { %v580_v61 = vpack.c.bf16 %v513_v59, %v512_v58  ;;  %v529_v62 = vld [vmem:[%s1135_s13 + $0x88] sm:$0xff]  ;;  %v562_v2 = vld [vmem:[%s1135_s13 + $0x190] sm:$0xff]  ;;  %v597_v3 = vpack.c.bf16 %v547_v1, %v546_v0  ;;  %v563_v4 = vld [vmem:[%s1135_s13 + $0x198] sm:$0xff] }
  0x4e   : > { %643 = vmatpush.bf16.msrb.mxu2 %v600_v31  ;;  %657 = vmatpush.bf16.msrb.mxu3 %v608_v33  ;;  %v588_v63 = vpack.c.bf16 %v529_v62, %v528_v60  ;;  %v605_v5 = vpack.c.bf16 %v563_v4, %v562_v2  ;;  %v544_v6 = vld [vmem:[%s1135_s13 + $0x100] sm:$0xff]  ;;  %v545_v7 = vld [vmem:[%s1135_s13 + $0x108] sm:$0xff] }
  0x4f   : > { %v560_v8 = vld [vmem:[%s1135_s13 + $0x180] sm:$0xff]  ;;  %v596_v9 = vpack.c.bf16 %v545_v7, %v544_v6  ;;  %v561_v10 = vld [vmem:[%s1135_s13 + $0x188] sm:$0xff] }
  0x50   : > { %616 = vmatpush.bf16.msrb.mxu0 %v583_v25  ;;  %630 = vmatpush.bf16.msrb.mxu1 %v591_v27  ;;  %v604_v11 = vpack.c.bf16 %v561_v10, %v560_v8  ;;  %v432_v12 = vld [vmem:[%s388_s8] sm:$0xf]  ;;  %v511_v59 = vld [vmem:[#allocation2 + $0x8] sm:$0xff] }
  0x51   : > { %v434_v14 = vperm.slane %v432_v12, 0  ;;  %v435_v16 = vperm.slane %v432_v12, 1  ;;  %v436_v26 = vperm.slane %v432_v12, 2  ;;  %v437_v28 = vperm.slane %v432_v12, 3 }
  0x52   : > { %644 = vmatpush.bf16.msrb.mxu2 %v599_v43  ;;  %658 = vmatpush.bf16.msrb.mxu3 %v607_v45 }
  0x54   : > { %617 = vmatpush.bf16.msrb.mxu0 %v582_v37  ;;  %631 = vmatpush.bf16.msrb.mxu1 %v590_v39 }
  0x56   : > { %645 = vmatpush.bf16.msrb.mxu2 %v598_v55  ;;  %659 = vmatpush.bf16.msrb.mxu3 %v606_v57 }
  0x58   : > { %618 = vmatpush.bf16.msrb.mxu0 %v581_v49  ;;  %632 = vmatpush.bf16.msrb.mxu1 %v589_v51  ;;  %v510_v51 = vld [vmem:[#allocation2] sm:$0xff] }
  0x5a   : > { %646 = vmatpush.bf16.msrb.mxu2 %v597_v3  ;;  %660 = vmatpush.bf16.msrb.mxu3 %v605_v5 }
  0x5c   : > { %619 = vmatpush.bf16.msrb.mxu0 %v580_v61  ;;  %633 = vmatpush.bf16.msrb.mxu1 %v588_v63 }
  0x5e   : > { %647 = vmatpush.bf16.msrb.mxu2 %v596_v9  ;;  %661 = vmatpush.bf16.msrb.mxu3 %v604_v11 }
  0xbc   : > { %v455_v13 = vpop.f32.mrf.mxu0  ;;  %v469_v15 = vpop.f32.mrf.mxu1 }
  0xbd   : > { %v456_v17 = vadd.f32 %v455_v13, %v434_v14  ;;  %v470_v18 = vadd.f32 %v469_v15, %v435_v16 }
  0xbf   : > { %v502_v22 = vmax.f32 %v456_v17, 0.0  ;;  %v503_v25 = vmax.f32 %v470_v18, 0.0 }
  0xc4   : > { %v483_v19 = vpop.f32.mrf.mxu2  ;;  %v497_v20 = vpop.f32.mrf.mxu3 }
  0xc5   : > { %v457_v21 = vpop.f32.mrf.mxu0  ;;  %v471_v24 = vpop.f32.mrf.mxu1  ;;  %v484_v32 = vadd.f32 %v483_v19, %v436_v26  ;;  %v498_v34 = vadd.f32 %v497_v20, %v437_v28 }
  0xc6   : > { %v458_v23 = vadd.f32 %v457_v21, %v434_v14  ;;  %v472_v27 = vadd.f32 %v471_v24, %v435_v16 }
  0xc7   : > { %v504_v39 = vmax.f32 %v484_v32, 0.0  ;;  %v505_v41 = vmax.f32 %v498_v34, 0.0 }
  0xc8   : > { %v506_v29 = vmax.f32 %v458_v23, 0.0  ;;  %v507_v30 = vmax.f32 %v472_v27, 0.0 }
  0xca   : > { %v576_v31 = vpack.c.bf16 %v506_v29, %v502_v22  ;;  %v577_v33 = vpack.c.bf16 %v507_v30, %v503_v25 }
  0xcc   : > { %v485_v35 = vpop.f32.mrf.mxu2  ;;  %620 = vmatmul.bf16.vlgmr.msrb.gmra.mxu0 %v576_v31  ;;  %v499_v37 = vpop.f32.mrf.mxu3  ;;  %634 = vmatmul.bf16.vlgmr.msrb.gmra.mxu1 %v577_v33 }
  0xcd   : > { %v486_v36 = vadd.f32 %v485_v35, %v436_v26  ;;  %v500_v38 = vadd.f32 %v499_v37, %v437_v28 }
  0xcf   : > { %v508_v40 = vmax.f32 %v486_v36, 0.0  ;;  %v509_v42 = vmax.f32 %v500_v38, 0.0 }
  0xd1   : > { %v578_v43 = vpack.c.bf16 %v508_v40, %v504_v39  ;;  %v579_v44 = vpack.c.bf16 %v509_v42, %v505_v41 }
  0xd3   : > { %648 = vmatmul.bf16.vlgmr.msrb.gmra.mxu2 %v578_v43  ;;  %662 = vmatmul.bf16.vlgmr.msrb.gmra.mxu3 %v579_v44 }
 0x149   : > { %v621_v45 = vpop.f32.mrf.mxu0  ;;  %v635_v46 = vpop.f32.mrf.mxu1 }
 0x14a   : > { %v636_v47 = vadd.f32 %v635_v46, %v621_v45 }
 0x151   : > { %v623_v53 = vpop.f32.mrf.mxu0  ;;  %v637_v54 = vpop.f32.mrf.mxu1 }
 0x152   : > { %v638_v56 = vadd.f32 %v637_v54, %v623_v53 }
 0x156   : > { %v649_v48 = vpop.f32.mrf.mxu2  ;;  %v663_v50 = vpop.f32.mrf.mxu3 }
 0x157   : > { %v650_v49 = vadd.f32 %v649_v48, %v636_v47 }
 0x159   : > { %v664_v52 = vadd.f32 %v663_v50, %v650_v49 }
 0x15b   : > { %v668_v55 = vadd.f32 %v664_v52, %v510_v51 }
 0x15d   : > { %670 = vst.msk [vmem:[#allocation2] sm:$0xff] %vm442_vm1, %v668_v55 }
 0x15e   : > { %v651_v57 = vpop.f32.mrf.mxu2  ;;  %v665_v60 = vpop.f32.mrf.mxu3 }
 0x15f   : > { %v652_v58 = vadd.f32 %v651_v57, %v638_v56 }
 0x161   : > { %v666_v61 = vadd.f32 %v665_v60, %v652_v58  ;;  %675 = sbr.rel (%p876_p12) target bundleno = 641 (0x281), region = 79 }
 0x163   : > { %v669_v62 = vadd.f32 %v666_v61, %v511_v59 }
 0x165   : > { %671 = vst.msk [vmem:[#allocation2 + $0x8] sm:$0xff] %vm442_vm1, %v669_v62 }
 0x166   : > { %v676_v63 = vld [vmem:[#allocation2] sm:$0xff]  ;;  %v685_v6 = vld [vmem:[%s1279_s0 + $0x8] sm:$0xff]  ;;  %v1015_v10 = vmov 32.0  }
 0x167   : > { %v933_v0 = vld [vmem:[%s1283_s4] ss:$0 sm:$0xff]  ;;  %936 = vrcp.f32 %v1015_v10 }
 0x168   : > { %v684_v1 = vld [vmem:[%s1279_s0] sm:$0xff]  ;;  %v682_v3 = vadd.f32 %v933_v0, %v676_v63 }
 0x169   : > { %v934_v41 = vld [vmem:[%s1284_s5] ss:$0 sm:$0xff] }
 0x16a   : > { %v686_v4 = vadd.f32 %v684_v1, %v682_v3  ;;  %v935_v44 = vld [vmem:[%s1285_s6] ss:$0 sm:$0xff] }
 0x16c   : > { %v677_v2 = vld [vmem:[#allocation2 + $0x8] sm:$0xff]  ;;  %v688_v7 = vsel %vm442_vm1, %v686_v4, 0.0 }
 0x16d   : > { %v683_v5 = vadd.f32 %v933_v0, %v677_v2  ;;  %689 = vadd.xlane.f32.xlu0 %v688_v7  ;;  %v937_v11 = vpop.eup %936 }
 0x16e   : > { %v695_v12 = vmul.f32 32.0, %v937_v11  ;;  %vm699_vm2 = vweird.f32 %v937_v11 }
 0x16f   : > { %v687_v8 = vadd.f32 %v685_v6, %v683_v5 }
 0x170   : > { %v696_v13 = vsub.f32 1.0, %v695_v12 }
 0x171   : > { %v691_v9 = vsel %vm442_vm1, %v687_v8, 0.0 }
 0x172   : > { %v697_v14 = vmul.f32 %v937_v11, %v696_v13 }
 0x174   : > { %v698_v15 = vadd.f32 %v937_v11, %v697_v14 }
 0x175   : > { %692 = vadd.xlane.f32.xlu0 %v691_v9 }
 0x176   : > { %v700_v16 = vsel %vm699_vm2, %v937_v11, %v698_v15 }
 0x1e0   : > { %v690_v17 = vpop.xlane.xlu0 %689 }
 0x1e1   : > { %v701_v18 = vmul.f32 %v700_v16, %v690_v17 }
 0x1e3   : > { %v703_v19 = vsub.f32 %v686_v4, %v701_v18 }
 0x1e5   : > { %v705_v20 = vmul.f32 %v703_v19, %v703_v19 }
 0x1e7   : > { %v707_v21 = vsel %vm442_vm1, %v705_v20, 0.0 }
 0x1e8   : > { %708 = vadd.xlane.f32.xlu1 %v707_v21  ;;  %v693_v22 = vpop.xlane.xlu0 %692 }
 0x1e9   : > { %v702_v23 = vmul.f32 %v700_v16, %v693_v22 }
 0x1eb   : > { %v704_v24 = vsub.f32 %v687_v8, %v702_v23 }
 0x1ed   : > { %v706_v25 = vmul.f32 %v704_v24, %v704_v24 }
 0x1ef   : > { %v710_v26 = vsel %vm442_vm1, %v706_v25, 0.0 }
 0x1f0   : > { %711 = vadd.xlane.f32.xlu1 %v710_v26 }
 0x25b   : > { %v709_v27 = vpop.xlane.xlu1 %708 }
 0x25c   : > { %v713_v28 = vmul.f32 %v709_v27, %v700_v16 }
 0x25e   : > { %v715_v29 = vadd.f32 1e-05, %v713_v28 }
 0x260   : > { %938 = vrsqrt.f32 %v715_v29  ;;  %vm723_vm4 = vweird.f32 %v715_v29 }
 0x263   : > { %v712_v30 = vpop.xlane.xlu1 %711 }
 0x264   : > { %v714_v31 = vmul.f32 %v712_v30, %v700_v16 }
 0x266   : > { %v939_v32 = vpop.eup %938  ;;  %v716_v33 = vadd.f32 1e-05, %v714_v31 }
 0x267   : > { %v718_v34 = vmul.f32 %v939_v32, %v715_v29  ;;  %vm724_vm3 = vweird.f32 %v939_v32 }
 0x268   : > { %940 = vrsqrt.f32 %v716_v33  ;;  %vm725_vm5 = vmor %vm723_vm4, %vm724_vm3  ;;  %vm733_vm7 = vweird.f32 %v716_v33 }
 0x269   : > { %v719_v35 = vmul.f32 %v939_v32, %v718_v34 }
 0x26b   : > { %v720_v36 = vmul.f32 0.5, %v719_v35 }
 0x26d   : > { %v721_v37 = vsub.f32 1.5, %v720_v36 }
 0x26e   : > { %v941_v38 = vpop.eup %940 }
 0x26f   : > { %v722_v39 = vmul.f32 %v939_v32, %v721_v37  ;;  %v728_v40 = vmul.f32 %v941_v38, %v716_v33  ;;  %vm734_vm6 = vweird.f32 %v941_v38 }
 0x270   : > { %vm735_vm8 = vmor %vm733_vm7, %vm734_vm6 }
 0x271   : > { %v726_v42 = vsel %vm725_vm5, %v939_v32, %v722_v39  ;;  %v729_v43 = vmul.f32 %v941_v38, %v728_v40 }
 0x272   : > { %v737_v45 = vmul.f32 %v726_v42, %v703_v19 }
 0x273   : > { %v730_v46 = vmul.f32 0.5, %v729_v43 }
 0x274   : > { %v743_v47 = vmul.f32 %v934_v41, %v737_v45 }
 0x275   : > { %v731_v48 = vsub.f32 1.5, %v730_v46 }
 0x276   : > { %v749_v49 = vadd.f32 %v935_v44, %v743_v47 }
 0x277   : > { %v732_v50 = vmul.f32 %v941_v38, %v731_v48 }
 0x278   : > { %751 = vst.msk [vmem:[#allocation4] sm:$0xff] %vm442_vm1, %v749_v49 }
 0x279   : > { %v736_v51 = vsel %vm735_vm8, %v941_v38, %v732_v50 }
 0x27a   : > { %v738_v52 = vmul.f32 %v736_v51, %v704_v24 }
 0x27c   : > { %v744_v53 = vmul.f32 %v934_v41, %v738_v52 }
 0x27e   : > { %v750_v54 = vadd.f32 %v935_v44, %v744_v53 }
 0x280   : > { %752 = vst.msk [vmem:[#allocation4 + $0x8] sm:$0xff] %vm442_vm1, %v750_v54 }
 0x281 PF: > { %p886_p13 = scmp.eq.s32.totalorder %s859_s29, 3  ;;  %s763_s15 = sshll.u32 %s1286_s7, 4  ;;  %s764_s15 = int_to_ptr.hbm [resolvable:$true] %s763_s15 }
 0x282   : > { %s1016_s16 = smov [#allocation4]   ;;  %s1017_s18 = smov 128  }
 0x283   : > { %s761_s17 = sshll.u32 %s1016_s16, 4  ;;  %s1018_s20 = smov 8   ;;  %s762_s17 = int_to_ptr.vmem [resolvable:$true] %s761_s17 }
 0x284   : > { %883 = dma.vmem_to_hbm [thread:$0]  (%p886_p13), %s762_s17, 256, %s764_s15, [#allocation5], %s1017_s18, %s1017_s18, %s1018_s20  }
 0x285   : > { %991 = dma.done.wait (%p886_p13), [#allocation5], 256  }
 0x286   : > { %993 = vsyncadd (%p886_p13), [#allocation5], 4294967040 }
 0x287 PF: > { %s18_s28 = sadd.s32 1, %s1012_s28   ;;  %s1287_s24 = smov %s1000_s25 }
 0x288   : > { %p15_p0 = scmp.ge.s32.totalorder %s18_s28, 6   ;;  %s1288_s25 = smov %s1095_s10 }
 0x289   : > { %s1289_s26 = smov %s1008_s27  ;;  %s1290_s27 = smov %s1292_s30 }
 0x28a   :  { %17 = sbr.rel (!%p15_p0) target bundleno = 3 (0x3), region = 121 }
 0x28f   :  { %780 = vsyncpa [#allocation5], 1 }
 0x290   :  { %782 = vsyncpa [#allocation5 + $0x1], 1 }

</bundles_post_ra>
